<compile_context>
chip_gen: v7x
topology: tpu7x:2x2x1
jax: 0.10.0
libtpu: 0.0.40
codegen_flags: <defaults>
</compile_context>

<pallas_src>
import functools

import jax
import jax.numpy as jnp
from jax import lax
from jax.experimental import pallas as pl
from jax.experimental.pallas import tpu as pltpu


def _round_up(x, m):
    return (x + m - 1) // m * m


def lstm0_kernel(xb_ref, w_ref, b_ref, out_ref, *, C, G, Wp, nrows):
    """One band of output pixels.

    xb_ref  : (band_rows_p, C) bf16  flattened padded pixels for this band
              (row q = h*Wp + w, row-major over the zero-padded image),
              including the halo rows the 3x3 taps need.
    w_ref   : (9*C, 3*G) bf16        fused [Wg | 0.5*Wi | 0.5*Wo], rows
              ordered (kh, kw, c).
    b_ref   : (1, 3*G) f32           fused [bg | 0.5*bi | 0.5*bo].
    out_ref : (nrows, 2*G) f32       [cell | hide] for every q row of the band.
    """
    # In-VMEM im2col: with pixels flattened row-major over the padded width,
    # tap (kh, kw) is the same buffer shifted by kh*Wp + kw rows -> nine
    # static row slices + one lane concat, no HBM patch materialization.
    cols = []
    for kh in range(3):
        for kw in range(3):
            off = kh * Wp + kw
            cols.append(xb_ref[pl.ds(off, nrows), :])
    patches = jnp.concatenate(cols, axis=-1)                    # (nrows, 9C) bf16

    # Single fused MXU matmul for all three gates; bias added once (hoisted).
    acts = jnp.dot(patches, w_ref[...],
                   preferred_element_type=jnp.float32) + b_ref[...]

    # One EUP tanh pass covers tanh(g) and both sigmoids: the i/o
    # pre-activations were pre-scaled by 0.5 in the wrapper, so
    # 0.5*(tanh(.)+1) below is exactly sigmoid of the original value.
    t = jnp.tanh(acts)
    g = t[:, :G]
    i = 0.5 * (t[:, G:2 * G] + 1.0)
    o = 0.5 * (t[:, 2 * G:] + 1.0)
    cell = jnp.tanh(g * i)
    hide = o * cell

    # Packed store: cell and hide are contiguous halves of a 64-lane slab, so
    # the wrapper unpack is a pure slice + reshape (no gather).
    out_ref[...] = jnp.concatenate([cell, hide], axis=-1).astype(out_ref.dtype)


def _pick_band_rows(H, Wp, row_cap=4096):
    """Rows of the padded-width output per band = TH * Wp.

    Use a single full-extent band whenever it fits (no pointless grid steps on
    single-TC chips); otherwise the largest divisor TH of H whose band stays
    under `row_cap` rows and keeps the output block 8-row aligned.  A single
    full-extent band is always a legal BlockSpec, so it is the fallback.
    """
    if H * Wp <= row_cap:
        return H
    for th in range(H, 0, -1):
        if H % th == 0 and th * Wp <= row_cap and (th * Wp) % 8 == 0:
            return th
    return H


@jax.jit
def lstm0_forward(xt_nchw, wg, bg, wi, bi, wo, bo):
    """xt_nchw: (B, C_in, H, W).  Weights w*: (3, 3, C_in, ngf) HWIO, b*: (ngf,).

    Returns (cell_1, hide_1), each (B, ngf, H, W) (NCHW, like PyTorch).
    """
    B, C, H, W = xt_nchw.shape
    G = wg.shape[-1]
    Hp, Wp = H + 2, W + 2
    K = 9 * C

    # ---- input prep (small arrays, XLA): pad, flatten pixels row-major, and
    # split into halo-overlapping row bands (overlap is only 2 image rows per
    # band, vs the 9x read amplification of a full XLA-side im2col).
    x_nhwc = jnp.transpose(xt_nchw, (0, 2, 3, 1))
    x_pad = jnp.pad(x_nhwc, ((0, 0), (1, 1), (1, 1), (0, 0))).astype(jnp.bfloat16)
    X = x_pad.reshape(B, Hp * Wp, C)

    TH = _pick_band_rows(H, Wp)
    nb = H // TH
    nrows = TH * Wp                          # output rows (q) per band
    band_need = nrows + 2 * Wp + 2           # input rows the band's taps touch
    band_rows_p = _round_up(band_need, 8)

    # The last band's taps read a couple of rows past the padded image; add a
    # small zero tail so every static band slice is in range.
    pad_tail = max(0, (nb - 1) * nrows + band_rows_p - Hp * Wp)
    Xr = jnp.pad(X, ((0, 0), (0, pad_tail), (0, 0)))
    x_bands = jnp.stack(
        [Xr[:, r * nrows:r * nrows + band_rows_p, :] for r in range(nb)],
        axis=1)                              # (B, nb, band_rows_p, C) bf16

    # Fused gate weights/bias, (kh, kw, c) row order matching the patch build.
    # sigmoid(z) == 0.5*(tanh(z/2)+1): fold the 1/2 into the i/o parameters.
    wf = jnp.concatenate(
        [wg.reshape(K, G), 0.5 * wi.reshape(K, G), 0.5 * wo.reshape(K, G)],
        axis=-1).astype(jnp.bfloat16)
    bf = jnp.concatenate([bg, 0.5 * bi, 0.5 * bo]).reshape(1, 3 * G)
    bf = bf.astype(jnp.float32)

    grid = (B, nb)
    x_spec = pl.BlockSpec((None, None, band_rows_p, C), lambda b, r: (b, r, 0, 0))
    w_spec = pl.BlockSpec((K, 3 * G), lambda b, r: (0, 0))      # resident in VMEM
    b_spec = pl.BlockSpec((1, 3 * G), lambda b, r: (0, 0))      # resident in VMEM
    o_spec = pl.BlockSpec((None, nrows, 2 * G), lambda b, r: (b, r, 0))

    # Explicit VMEM budget for the grown tiles (accounts for the 128-lane
    # padding of the skinny C-lane input blocks); generous headroom, but well
    # inside every generation's VMEM (v7x physical is 64 MiB).
    def _lanes(n):
        return _round_up(n, 128)
    est = (2 * _round_up(band_rows_p, 16) * _lanes(C) * 2          # x (2 bufs)
           + 2 * nrows * _lanes(2 * G) * 4                         # out (2 bufs)
           + 2 * (K * _lanes(3 * G) * 2 + _lanes(3 * G) * 4)       # weights + bias
           + nrows * (_lanes(K) * 2 + 3 * _lanes(3 * G) * 4))      # patch/act temps
    vmem_limit = int(min(max(3 * est, 32 * 1024 * 1024), 48 * 1024 * 1024))

    out = pl.pallas_call(
        functools.partial(lstm0_kernel, C=C, G=G, Wp=Wp, nrows=nrows),
        out_shape=jax.ShapeDtypeStruct((B, H * Wp, 2 * G), jnp.float32),
        grid_spec=pltpu.PrefetchScalarGridSpec(
            num_scalar_prefetch=0,
            grid=grid,
            in_specs=[x_spec, w_spec, b_spec],
            out_specs=o_spec,
        ),
        compiler_params=pltpu.CompilerParams(
            dimension_semantics=("parallel", "parallel"),
            vmem_limit_bytes=vmem_limit,
        ),
    )(x_bands, wf, bf)

    # Unpack: rows are (h, w) over the padded width; first G lanes = cell,
    # next G = hide.  Drop the 2 garbage padded-width columns and return NCHW
    # like the PyTorch module.  (The NCHW transposes are the only remaining
    # full-output XLA copies; emit NHWC here if the consumer allows it.)
    o = out.reshape(B, H, Wp, 2, G)
    cell = jnp.transpose(o[:, :, :W, 0, :], (0, 3, 1, 2))
    hide = jnp.transpose(o[:, :, :W, 1, :], (0, 3, 1, 2))
    return cell, hide


def _reference(xt_nchw, wg, bg, wi, bi, wo, bo):
    """Pure-JAX f32 HIGHEST-precision reference using lax conv (NHWC/HWIO)."""
    x = jnp.transpose(xt_nchw, (0, 2, 3, 1))
    dn = lax.conv_dimension_numbers(x.shape, wg.shape, ("NHWC", "HWIO", "NHWC"))

    def conv(w, b):
        y = lax.conv_general_dilated(x, w, (1, 1), "SAME", dimension_numbers=dn,
                                     precision=lax.Precision.HIGHEST)
        return y + b

    gx = jnp.tanh(conv(wg, bg))
    ix = jax.nn.sigmoid(conv(wi, bi))
    ox = jax.nn.sigmoid(conv(wo, bo))
    cell = jnp.tanh(gx * ix)
    hide = ox * cell
    return (cell.transpose(0, 3, 1, 2), hide.transpose(0, 3, 1, 2))


if __name__ == "__main__":
    # Small shapes consistent with the module's forward: xt is (B, in_c, H, W).
    B, in_c, H, W = 2, 4, 16, 16
    ngf = 32

    key = jax.random.PRNGKey(0)
    kx, kg, ki, ko, kbg, kbi, kbo = jax.random.split(key, 7)

    xt = jax.random.normal(kx, (B, in_c, H, W), dtype=jnp.float32)

    # Deterministic conv parameters, stored as (KH, KW, C_in, C_out).
    scale = 1.0 / jnp.sqrt(9.0 * in_c)
    wg = jax.random.uniform(kg, (3, 3, in_c, ngf), jnp.float32, -scale, scale)
    wi = jax.random.uniform(ki, (3, 3, in_c, ngf), jnp.float32, -scale, scale)
    wo = jax.random.uniform(ko, (3, 3, in_c, ngf), jnp.float32, -scale, scale)
    bg = jax.random.uniform(kbg, (ngf,), jnp.float32, -scale, scale)
    bi = jax.random.uniform(kbi, (ngf,), jnp.float32, -scale, scale)
    bo = jax.random.uniform(kbo, (ngf,), jnp.float32, -scale, scale)

    cell_1, hide_1 = lstm0_forward(xt, wg, bg, wi, bi, wo, bo)
    jax.block_until_ready((cell_1, hide_1))

    cell_ref, hide_ref = _reference(xt, wg, bg, wi, bi, wo, bo)

    assert cell_1.shape == (B, ngf, H, W) and hide_1.shape == (B, ngf, H, W)
    # bf16 MXU inputs (single-pass matmul) vs f32 HIGHEST reference: compare
    # at a bf16-appropriate tolerance (outputs are bounded in [-1, 1]).
    assert jnp.allclose(cell_1, cell_ref, atol=2e-2, rtol=2e-2)
    assert jnp.allclose(hide_1, hide_ref, atol=2e-2, rtol=2e-2)

    print("KERNEL_OK")
</pallas_src>

<mosaic_0001>
module attributes {stable_mosaic.version = 11 : i64} {
  func.func @lstm0_kernel(%arg0: i32, %arg1: i32, %arg2: memref<1x1x328x4xbf16, #tpu.memory_space<vmem>>, %arg3: memref<36x96xbf16, #tpu.memory_space<vmem>>, %arg4: memref<1x96xf32, #tpu.memory_space<vmem>>, %arg5: memref<1x288x64xf32, #tpu.memory_space<vmem>>) attributes {dimension_semantics = [#tpu.dimension_semantics<parallel>, #tpu.dimension_semantics<parallel>], iteration_bounds = array<i64: 2, 1>, scalar_prefetch = 0 : i64, scratch_operands = 0 : i64, tpu.core_type = #tpu.core_type<tc>, window_params = [{transform_indices = @transform_0, window_bounds = array<i64: 1, 1, 328, 4>}, {pipeline_mode = #tpu.pipeline_mode<synchronous>, transform_indices = @transform_1, window_bounds = array<i64: 36, 96>}, {pipeline_mode = #tpu.pipeline_mode<synchronous>, transform_indices = @transform_2, window_bounds = array<i64: 1, 96>}, {transform_indices = @transform_3, window_bounds = array<i64: 1, 288, 64>}]} {
    %c0 = arith.constant 0 : index
    %c0_0 = arith.constant 0 : index
    %c0_1 = arith.constant 0 : index
    %c0_2 = arith.constant 0 : index
    %0 = vector.load %arg2[%c0, %c0_0, %c0_1, %c0_2] : memref<1x1x328x4xbf16, #tpu.memory_space<vmem>>, vector<1x1x288x4xbf16>
    %1 = vector.shape_cast %0 : vector<1x1x288x4xbf16> to vector<288x4xbf16>
    %c0_3 = arith.constant 0 : index
    %c0_4 = arith.constant 0 : index
    %c1 = arith.constant 1 : index
    %c0_5 = arith.constant 0 : index
    %2 = vector.load %arg2[%c0_3, %c0_4, %c1, %c0_5] : memref<1x1x328x4xbf16, #tpu.memory_space<vmem>>, vector<1x1x288x4xbf16>
    %3 = vector.shape_cast %2 : vector<1x1x288x4xbf16> to vector<288x4xbf16>
    %c0_6 = arith.constant 0 : index
    %c0_7 = arith.constant 0 : index
    %c2 = arith.constant 2 : index
    %c0_8 = arith.constant 0 : index
    %4 = vector.load %arg2[%c0_6, %c0_7, %c2, %c0_8] : memref<1x1x328x4xbf16, #tpu.memory_space<vmem>>, vector<1x1x288x4xbf16>
    %5 = vector.shape_cast %4 : vector<1x1x288x4xbf16> to vector<288x4xbf16>
    %c0_9 = arith.constant 0 : index
    %c0_10 = arith.constant 0 : index
    %c18 = arith.constant 18 : index
    %c0_11 = arith.constant 0 : index
    %6 = vector.load %arg2[%c0_9, %c0_10, %c18, %c0_11] : memref<1x1x328x4xbf16, #tpu.memory_space<vmem>>, vector<1x1x288x4xbf16>
    %7 = vector.shape_cast %6 : vector<1x1x288x4xbf16> to vector<288x4xbf16>
    %c0_12 = arith.constant 0 : index
    %c0_13 = arith.constant 0 : index
    %c19 = arith.constant 19 : index
    %c0_14 = arith.constant 0 : index
    %8 = vector.load %arg2[%c0_12, %c0_13, %c19, %c0_14] : memref<1x1x328x4xbf16, #tpu.memory_space<vmem>>, vector<1x1x288x4xbf16>
    %9 = vector.shape_cast %8 : vector<1x1x288x4xbf16> to vector<288x4xbf16>
    %c0_15 = arith.constant 0 : index
    %c0_16 = arith.constant 0 : index
    %c20 = arith.constant 20 : index
    %c0_17 = arith.constant 0 : index
    %10 = vector.load %arg2[%c0_15, %c0_16, %c20, %c0_17] : memref<1x1x328x4xbf16, #tpu.memory_space<vmem>>, vector<1x1x288x4xbf16>
    %11 = vector.shape_cast %10 : vector<1x1x288x4xbf16> to vector<288x4xbf16>
    %c0_18 = arith.constant 0 : index
    %c0_19 = arith.constant 0 : index
    %c36 = arith.constant 36 : index
    %c0_20 = arith.constant 0 : index
    %12 = vector.load %arg2[%c0_18, %c0_19, %c36, %c0_20] : memref<1x1x328x4xbf16, #tpu.memory_space<vmem>>, vector<1x1x288x4xbf16>
    %13 = vector.shape_cast %12 : vector<1x1x288x4xbf16> to vector<288x4xbf16>
    %c0_21 = arith.constant 0 : index
    %c0_22 = arith.constant 0 : index
    %c37 = arith.constant 37 : index
    %c0_23 = arith.constant 0 : index
    %14 = vector.load %arg2[%c0_21, %c0_22, %c37, %c0_23] : memref<1x1x328x4xbf16, #tpu.memory_space<vmem>>, vector<1x1x288x4xbf16>
    %15 = vector.shape_cast %14 : vector<1x1x288x4xbf16> to vector<288x4xbf16>
    %c0_24 = arith.constant 0 : index
    %c0_25 = arith.constant 0 : index
    %c38 = arith.constant 38 : index
    %c0_26 = arith.constant 0 : index
    %16 = vector.load %arg2[%c0_24, %c0_25, %c38, %c0_26] : memref<1x1x328x4xbf16, #tpu.memory_space<vmem>>, vector<1x1x288x4xbf16>
    %17 = vector.shape_cast %16 : vector<1x1x288x4xbf16> to vector<288x4xbf16>
    %18 = tpu.concatenate %1, %3, %5, %7, %9, %11, %13, %15, %17 in 1 : vector<288x4xbf16>, vector<288x4xbf16>, vector<288x4xbf16>, vector<288x4xbf16>, vector<288x4xbf16>, vector<288x4xbf16>, vector<288x4xbf16>, vector<288x4xbf16>, vector<288x4xbf16> -> vector<288x36xbf16>
    %c0_27 = arith.constant 0 : index
    %c0_28 = arith.constant 0 : index
    %19 = vector.load %arg3[%c0_27, %c0_28] : memref<36x96xbf16, #tpu.memory_space<vmem>>, vector<36x96xbf16>
    %cst = arith.constant dense<0.000000e+00> : vector<288x96xf32>
    %20 = tpu.matmul %18, %19, %cst {dimension_numbers = #tpu.dot_dimension_numbers<[1], [0], [0], [1], [0, 0, 1, 1], [], []>} : vector<288x36xbf16>, vector<36x96xbf16>, vector<288x96xf32> -> vector<288x96xf32>
    %c0_29 = arith.constant 0 : index
    %c0_30 = arith.constant 0 : index
    %21 = vector.load %arg4[%c0_29, %c0_30] : memref<1x96xf32, #tpu.memory_space<vmem>>, vector<1x96xf32>
    %22 = vector.broadcast %21 : vector<1x96xf32> to vector<288x96xf32>
    %23 = arith.addf %20, %22 : vector<288x96xf32>
    %24 = math.tanh %23 : vector<288x96xf32>
    %25 = vector.extract_strided_slice %24 {offsets = [0, 0], sizes = [288, 32], strides = [1, 1]} : vector<288x96xf32> to vector<288x32xf32>
    %26 = vector.extract_strided_slice %24 {offsets = [0, 32], sizes = [288, 32], strides = [1, 1]} : vector<288x96xf32> to vector<288x32xf32>
    %cst_31 = arith.constant 1.000000e+00 : f32
    %27 = vector.broadcast %cst_31 : f32 to vector<288x32xf32>
    %28 = arith.addf %26, %27 : vector<288x32xf32>
    %cst_32 = arith.constant 5.000000e-01 : f32
    %29 = vector.broadcast %cst_32 : f32 to vector<288x32xf32>
    %30 = arith.mulf %29, %28 : vector<288x32xf32>
    %31 = vector.extract_strided_slice %24 {offsets = [0, 64], sizes = [288, 32], strides = [1, 1]} : vector<288x96xf32> to vector<288x32xf32>
    %cst_33 = arith.constant 1.000000e+00 : f32
    %32 = vector.broadcast %cst_33 : f32 to vector<288x32xf32>
    %33 = arith.addf %31, %32 : vector<288x32xf32>
    %cst_34 = arith.constant 5.000000e-01 : f32
    %34 = vector.broadcast %cst_34 : f32 to vector<288x32xf32>
    %35 = arith.mulf %34, %33 : vector<288x32xf32>
    %36 = arith.mulf %25, %30 : vector<288x32xf32>
    %37 = math.tanh %36 : vector<288x32xf32>
    %38 = arith.mulf %35, %37 : vector<288x32xf32>
    %39 = tpu.concatenate %37, %38 in 1 : vector<288x32xf32>, vector<288x32xf32> -> vector<288x64xf32>
    %c0_35 = arith.constant 0 : index
    %c0_36 = arith.constant 0 : index
    %c0_37 = arith.constant 0 : index
    %40 = vector.load %arg5[%c0_35, %c0_36, %c0_37] : memref<1x288x64xf32, #tpu.memory_space<vmem>>, vector<1x288x64xf32>
    %41 = vector.shape_cast %40 : vector<1x288x64xf32> to vector<288x64xf32>
    %42 = vector.shape_cast %39 : vector<288x64xf32> to vector<1x288x64xf32>
    tpu.vector_store %arg5[%c0_35, %c0_36, %c0_37], %42 {strides = array<i32>} : memref<1x288x64xf32, #tpu.memory_space<vmem>>, vector<1x288x64xf32>,
    return
  }
  func.func @transform_0(%arg0: i32, %arg1: i32) -> (i32, i32, i32, i32) {
    %c0_i32 = arith.constant 0 : i32
    %c0_i32_0 = arith.constant 0 : i32
    %c0_i32_1 = arith.constant 0 : i32
    return %arg0, %arg1, %c0_i32, %c0_i32_0 : i32, i32, i32, i32
  }
  func.func @transform_1(%arg0: i32, %arg1: i32) -> (i32, i32) {
    %c0_i32 = arith.constant 0 : i32
    %c0_i32_0 = arith.constant 0 : i32
    %c0_i32_1 = arith.constant 0 : i32
    return %c0_i32, %c0_i32_0 : i32, i32
  }
  func.func @transform_2(%arg0: i32, %arg1: i32) -> (i32, i32) {
    %c0_i32 = arith.constant 0 : i32
    %c0_i32_0 = arith.constant 0 : i32
    %c0_i32_1 = arith.constant 0 : i32
    return %c0_i32, %c0_i32_0 : i32, i32
  }
  func.func @transform_3(%arg0: i32, %arg1: i32) -> (i32, i32, i32) {
    %c0_i32 = arith.constant 0 : i32
    %c0_i32_0 = arith.constant 0 : i32
    return %arg0, %arg1, %c0_i32 : i32, i32, i32
  }
}

</mosaic_0001>

<bundles_post_ra>
// kernel: lstm0_forward.1
= control target key start
LH: loop header
LB: loop body
LE: loop exit
PB: predicated region body
PF: predicated region fallthrough
CT: control target
= control target key end

     0   :  { %s2898_s12 = smov 0   ;;  %s2900_s13 = smov 0   ;;  %s4806_s0 = inlined_call_operand.vmem [shape: bf16[2,1,328,4], index: 0, kind: input, shape index: {}]   ;;  %s4807_s1 = inlined_call_operand.vmem [shape: bf16[36,96], index: 1, kind: input, shape index: {}]   ;;  %s4808_s2 = inlined_call_operand.vmem [shape: f32[1,96], index: 2, kind: input, shape index: {}]   ;;  %s4809_s3 = inlined_call_operand.vmem [shape: f32[2,288,64], index: 3, kind: output, shape index: {}]  }
   0x1   :  { %s2902_s14 = smov 0  }
   0x2 LB: > { %s25_s15 = sadd.s32 1, %s2862_s13  ;;  %p2490_p0 = scmp.ge.s32.totalorder %s2866_s14, 1  ;;  %s2866_s14 = sphi %s2902_s14, %s13_s14   ;;  %s2862_s13 = sphi %s2900_s13, %s4944_s13   ;;  %s2858_s12 = sphi %s2898_s12, %s4943_s12  }
   0x3   : > { %p27_p1 = scmp.ge.s32.totalorder %s25_s15, 2  ;;  %p157_p2 = scmp.lt.s32.totalorder %s2866_s14, 3 }
   0x5   : > { %s4946_s15 = smov (%p27_p1, %s25_s15), 0  ;;  %p158_p3 = pnand %p2490_p0, %p157_p2 }
   0x7   : > { %161 = sbr.rel (%p158_p3) target bundleno = 1042 (0x412), region = 32 }
   0xe   : > { %p189_p4 = scmp.lt.s32.totalorder %s2858_s12, 1  ;;  %vm540_vm0 = vcmask 1046528   ;;  %vm800_vm1 = vcmask 1045504   ;;  %vm352_vm2 = vsmask.f32 7424  ;;  %s2868_s20 = smov 12  }
   0xf   : > { %s2869_s21 = smov 8   ;;  %s2870_s22 = smov 20   ;;  %vm670_vm3 = vsmask.f32 6400  ;;  %vm930_vm4 = vsmask.f32 5376 }
  0x10   : > { %s4948_s12 = smov (!%p189_p4, %s2858_s12), 1  ;;  %s2871_s23 = smov 4   ;;  %vm1060_vm5 = vcmask 1044480   ;;  %vm1494_vm6 = vcmask 1041408   ;;  %vm1134_vm7 = vcmask 31744   ;;  %vm1171_vm8 = vcmask 64512  }
  0x11   : > { %s2618_s16 = smul.u32 164, %s4948_s12  ;;  %s2872_s28 = smov 16   ;;  %vm1208_vm9 = vcmask 97280   ;;  %vm1245_vm10 = vcmask 130048   ;;  %vm1282_vm11 = vcmask 162816   ;;  %vm1319_vm12 = vcmask 195584  }
  0x12   : > { %s2873_s29 = smov 24   ;;  %s2874_s30 = smov 28   ;;  %vm1356_vm13 = vcmask 228352   ;;  %vm1393_vm14 = vcmask 261120   ;;  %vm1457_vm15 = vcmask 293888  }
  0x13   : > { %s2922_s19 = scalar_lea.vmem %s4806_s0, %s2618_s16  ;;  %s2875_s4 = smov 32  }
  0x14   : > { %v212_v0 = vld [vmem:[%s2922_s19 + $0xc] sm:$0xf]  ;;  %v213_v1 = vld [vmem:[%s2922_s19 + $0x10] sm:$0xf]  ;;  %v2927_v2 = vld [vmem:[%s2922_s19 + $0x14] sm:$0xf] }
  0x15   : > { %v247_v3 = vld [vmem:[%s2922_s19 + $0x8] sm:$0xe]  ;;  %v2931_v4 = vcombine.low %v213_v1, %v2927_v2  ;;  %v210_v5 = vld [vmem:[%s2922_s19 + $0x4] sm:$0xf]  ;;  %v246_v8 = vld [vmem:[%s2922_s19] sm:$0xe] }
  0x16   : > { %v211_v6 = vld [vmem:[%s2922_s19 + $0x8] sm:$0xf]  ;;  %v2513_v7 = vcombine.low %v247_v3, %v212_v0  ;;  %v209_v10 = vld [vmem:[%s2922_s19] sm:$0xf]  ;;  %v2512_v13 = vcombine.low %v246_v8, %v210_v5  ;;  %v2944_v16 = vld [vmem:[%s2922_s19 + $0x18] sm:$0xff]   ;;  %s2876_s9 = smov 96  }
  0x17   : > { %v2936_v9 = vcombine.low %v211_v6, %v212_v0  ;;  %v252_v11 = vld [vmem:[%s2922_s19 + $0x8] sm:$0xc]  ;;  %v544_v12 = vrot.slane %v2931_v4, 1  ;;  %v2941_v14 = vcombine.low %v209_v10, %v210_v5  ;;  %v802_v19 = vrot.slane %v2931_v4, 2  ;;  %v253_v34 = vld [vmem:[%s2922_s19 + $0x10] sm:$0xc] }
  0x18   : > { %v2517_v15 = vcombine.low %v252_v11, %v212_v0  ;;  %v625_v17 = vrot.slane %v2513_v7, 1  ;;  %v541_v21 = vrot.slane %v2512_v13, 1  ;;  %v546_v28 = vrot.slane %v2944_v16, 1  ;;  %v2975_v45 = vld [vmem:[%s2922_s19 + $0x20] sm:$0xff]   ;;  %v258_v1 = vld [vmem:[%s2922_s19 + $0x10] sm:$0x8] }
  0x19   : > { %v542_v18 = vrot.slane %v2936_v9, 1  ;;  %v361_v20 = vshll.u32 %v2936_v9, 16  ;;  %v354_v24 = vshrl.u32 %v2941_v14, 16  ;;  %v356_v25 = vshll.u32 %v2941_v14, 16  ;;  %v3005_v3 = vld [vmem:[%s2922_s19 + $0x50] sm:$0xff]   ;;  %v2673_v5 = vld [vmem:[%s4807_s1] sm:$0xff]  }
  0x1a   : > { %v801_v22 = vrot.slane %v2517_v15, 2  ;;  %v626_v23 = vsel %vm540_vm0, %v625_v17, %v544_v12  ;;  %v365_v31 = vshrl.u32 %v2936_v9, 16  ;;  %v369_v32 = vshll.u32 %v2931_v4, 16  ;;  %v2674_v11 = vld [vmem:[%s4807_s1 + $0x8] sm:$0xff]   ;;  %2568 = vmatprep.subr.bf16.mxu0 %v2673_v5  ;;  %2610 = vmatprep.subr.bf16.mxu1 %v2673_v5  ;;  %s2877_s10 = smov 64   ;;  %s2619_s11 = smul.u32 288, %s4948_s12 }
  0x1b   : > { %631 = vrot.lane.b32.xlu0 %v626_v23, %s2868_s20  ;;  %v543_v26 = vsel %vm540_vm0, %v541_v21, %v542_v18  ;;  %v363_v29 = vrot.slane %v361_v20, 1  ;;  %v358_v30 = vrot.slane %v356_v25, 1  ;;  %v373_v33 = vshrl.u32 %v2931_v4, 16  ;;  %2569 = vmatpush3.bf16.msra.mxu0 %v2673_v5 }
  0x1c   : > { %v803_v27 = vsel %vm800_vm1, %v801_v22, %v802_v19  ;;  %578 = vrot.lane.b32.xlu1 %v543_v26, %s2869_s21  ;;  %v545_v35 = vsel %vm540_vm0, %v542_v18, %v544_v12  ;;  %v2963_v36 = vshll.u32 %v2944_v16, 16  ;;  %v2966_v37 = vshrl.u32 %v2944_v16, 16  ;;  %2613 = vmatpush3.bf16.msra.mxu1 %v2673_v5  ;;  %v3026_v22 = vld [vmem:[%s2922_s19 + $0x58] sm:$0xff]   ;;  %s4645_s18 = scalar_lea.vmem %s4809_s3, %s2619_s11 }
  0x1d   : > { %v672_v38 = vshrl.u32 %v2513_v7, 16  ;;  %v359_v39 = vor.u32 %v358_v30, %v354_v24  ;;  %v804_v40 = vrot.slane %v2944_v16, 2  ;;  %v367_v41 = vor.u32 %v365_v31, %v363_v29  ;;  %2570 = vmatprep.subr.bf16.mxu0 %v2674_v11  ;;  %2611 = vmatprep.subr.bf16.mxu1 %v2674_v11 }
  0x1e   : > { %v2970_v42 = vrot.slane %v369_v32, 1  ;;  %v679_v43 = vrot.slane %v373_v33, 1  ;;  %v680_v44 = vrot.slane %v369_v32, 2  ;;  %v675_v48 = vshll.u32 %v2513_v7, 16 }
  0x1f   : > { %838 = vrot.lane.b32.xlu0 %v803_v27, %s2870_s22  ;;  %v364_v46 = vsel %vm352_vm2, %v359_v39, %v363_v29  ;;  %v674_v47 = vrot.slane %v672_v38, 1  ;;  %v2982_v49 = vsel %vm540_vm0, %v544_v12, %v546_v28  ;;  %v683_v50 = vrot.slane %v2966_v37, 1  ;;  %2571 = vmatpush3.bf16.msra.mxu0 %v2674_v11  ;;  %v3057_v38 = vld [vmem:[%s2922_s19 + $0x60] sm:$0xff]  }
  0x20   : > { %580 = vrot.lane.b32.xlu1 %v545_v35, %s2869_s21  ;;  %v684_v51 = vrot.slane %v2963_v36, 2  ;;  %v2518_v52 = vcombine.low %v253_v34, %v2927_v2  ;;  %v677_v53 = vrot.slane %v675_v48, 2  ;;  %v372_v54 = vsel %vm352_vm2, %v367_v41, %v2970_v42  ;;  %2614 = vmatpush3.bf16.msra.mxu1 %v2674_v11  ;;  %4859 = vst [vmem:[#allocation3_spill] sm:$0xff] %v3057_v38 }
  0x21   : > { %v681_v55 = vor.u32 %v680_v44, %v679_v43  ;;  %v805_v59 = vsel %vm800_vm1, %v802_v19, %v804_v40  ;;  %v2996_v61 = vshll.u32 %v2975_v45, 16  ;;  %v2999_v62 = vshrl.u32 %v2975_v45, 16 }
  0x22   : > { %v678_v56 = vor.u32 %v677_v53, %v674_v47  ;;  %v932_v57 = vshrl.u32 %v2518_v52, 16  ;;  %v935_v58 = vshll.u32 %v2518_v52, 16  ;;  %v2993_v60 = vor.u32 %v684_v51, %v683_v50 }
  0x23   : > { %501 = vrot.lane.b32.xlu0 %v364_v46, %s2871_s23  ;;  %v885_v63 = vrot.slane %v2518_v52, 2  ;;  %v939_v0 = vrot.slane %v2966_v37, 2  ;;  %v940_v7 = vrot.slane %v2963_v36, 3  ;;  %v806_v13 = vrot.slane %v2975_v45, 2 }
  0x24   : > { %633 = vrot.lane.b32.xlu1 %v2982_v49, %s2868_s20  ;;  %v682_v6 = vsel %vm670_vm3, %v678_v56, %v681_v55  ;;  %v934_v8 = vrot.slane %v932_v57, 2  ;;  %v937_v10 = vrot.slane %v935_v58, 3  ;;  %v686_v12 = vsel %vm670_vm3, %v681_v55, %v2993_v60  ;;  %v3106_v58 = vld [vmem:[%s2922_s19 + $0x68] sm:$0xff]  }
  0x25   : > { %v943_v15 = vrot.slane %v2999_v62, 2  ;;  %v944_v17 = vrot.slane %v2996_v61, 3  ;;  %v886_v18 = vsel %vm800_vm1, %v885_v63, %v804_v40  ;;  %v941_v19 = vor.u32 %v940_v7, %v939_v0 }
  0x26   : > { %v938_v20 = vor.u32 %v937_v10, %v934_v8  ;;  %v2522_v21 = vcombine.low %v258_v1, %v2927_v2  ;;  %v3029_v23 = vshll.u32 %v3005_v3, 16  ;;  %v3034_v24 = vsel %vm800_vm1, %v804_v40, %v806_v13 }
  0x27   : > { %503 = vrot.lane.b32.xlu0 %v372_v54, %s2871_s23  ;;  %v3036_v25 = vor.u32 %v944_v17, %v943_v15  ;;  %v1062_v2 = vrot.slane %v2944_v16, 3  ;;  %v3041_v26 = vshrl.u32 %v3005_v3, 16  ;;  %v3048_v31 = vshll.u32 %v3026_v22, 16 }
  0x28   : > { %840 = vrot.lane.b32.xlu1 %v805_v59, %s2870_s22  ;;  %v942_v27 = vsel %vm930_vm4, %v938_v20, %v941_v19  ;;  %v1061_v29 = vrot.slane %v2522_v21, 3  ;;  %v4813_v30 = vrot.slane %v3029_v23, 1  ;;  %v375_v34 = vor.u32 %v373_v33, %v2970_v42  ;;  %v3109_v59 = vld [vmem:[%s2922_s19 + $0x28] sm:$0xff]  }
  0x29   : > { %4858 = vst [vmem:[#allocation2_spill] sm:$0xff] %v3048_v31  ;;  %v946_v32 = vsel %vm930_vm4, %v941_v19, %v3036_v25  ;;  %v379_v35 = vrot.slane %v2963_v36, 1  ;;  %v443_v41 = vrot.slane %v3048_v31, 1  ;;  %v1064_v36 = vrot.slane %v2975_v45, 3 }
  0x2a   : > { %v1063_v39 = vsel %vm1060_vm5, %v1061_v29, %v1062_v2  ;;  %v439_v40 = vor.u32 %v3041_v26, %v4813_v30  ;;  %v3069_v42 = vshrl.u32 %v3026_v22, 16  ;;  %v3072_v43 = vshll.u32 %v3057_v38, 16 }
  0x2b   : > { %761 = vrot.lane.b32.xlu0 %v682_v6, %s2872_s28  ;;  %v380_v33 = vsel %vm352_vm2, %v375_v34, %v379_v35  ;;  %v383_v46 = vor.u32 %v2966_v37, %v379_v35  ;;  %v387_v47 = vrot.slane %v2996_v61, 1  ;;  %v1065_v48 = vsel %vm1060_vm5, %v1062_v2, %v1064_v36 }
  0x2c   : > { %763 = vrot.lane.b32.xlu1 %v686_v12, %s2872_s28  ;;  %4860 = vst [vmem:[#allocation4_spill] sm:$0xff] %v3069_v42  ;;  %v444_v44 = vsel %vm352_vm2, %v439_v40, %v443_v41  ;;  %v447_v50 = vor.u32 %v3069_v42, %v443_v41  ;;  %v451_v51 = vrot.slane %v3072_v43, 1  ;;  %v4812_v53 = vrot.slane %v3005_v3, 1 }
  0x2d   : > { %v388_v37 = vsel %vm352_vm2, %v383_v46, %v387_v47  ;;  %v562_v54 = vrot.slane %v3026_v22, 1  ;;  %v548_v55 = vrot.slane %v2975_v45, 1  ;;  %v564_v57 = vrot.slane %v3057_v38, 1 }
  0x2e   : > { %v452_v52 = vsel %vm352_vm2, %v447_v50, %v451_v51  ;;  %v3118_v1 = vshrl.u32 %v3057_v38, 16  ;;  %v550_v5 = vrot.slane %v3109_v59, 1  ;;  %v715_v6 = vrot.slane %v3069_v42, 1 }
  0x2f   : > { %891 = vrot.lane.b32.xlu0 %v886_v18, %s2873_s29  ;;  %v3100_v56 = vsel %vm540_vm0, %v4812_v53, %v562_v54  ;;  %v549_v63 = vsel %vm540_vm0, %v546_v28, %v548_v55  ;;  %v565_v0 = vsel %vm540_vm0, %v562_v54, %v564_v57  ;;  %v716_v7 = vrot.slane %v3048_v31, 2  ;;  %v2677_v18 = vld [vmem:[%s4807_s1 + $0x10] ss:$0 sps:$4 sm:$0x33]  }
  0x30   : > { %893 = vrot.lane.b32.xlu1 %v3034_v24, %s2873_s29  ;;  %4861 = vst [vmem:[#allocation5_spill] sm:$0xff] %v3100_v56  ;;  %v687_v16 = vrot.slane %v2999_v62, 1  ;;  %v688_v28 = vrot.slane %v2996_v61, 2  ;;  %v3129_v8 = vshll.u32 %v3109_v59, 16  ;;  %v3132_v10 = vshrl.u32 %v3109_v59, 16  ;;  %2616 = vmatprep.subr.msk.bf16.mxu0 %vm1494_vm6, %v2677_v18 }
  0x31   : > { %v719_v11 = vrot.slane %v3118_v1, 1  ;;  %v720_v12 = vrot.slane %v3072_v43, 2  ;;  %v3137_v15 = vshll.u32 %v3106_v58, 16  ;;  %v3140_v17 = vshrl.u32 %v3106_v58, 16  ;;  %2617 = vmatprep.subr.msk.bf16.mxu1 %vm1494_vm6, %v2677_v18 }
  0x32   : > { %v3154_v20 = vsel %vm540_vm0, %v548_v55, %v550_v5  ;;  %v3157_v21 = vor.u32 %v716_v7, %v715_v6  ;;  %v689_v2 = vor.u32 %v688_v28, %v687_v16  ;;  %v692_v29 = vrot.slane %v3129_v8, 2  ;;  %v3195_v55 = vld [vmem:[%s2922_s19 + $0x70] sm:$0xff]  }
  0x33   : > { %1021 = vrot.lane.b32.xlu0 %v942_v27, %s2874_s30  ;;  %v691_v27 = vrot.slane %v3132_v10, 1  ;;  %v723_v34 = vrot.slane %v3140_v17, 1  ;;  %v724_v35 = vrot.slane %v3137_v15, 2  ;;  %v1496_v41 = vsel %vm1494_vm6, %v2677_v18, 0 }
  0x34   : > { %1023 = vrot.lane.b32.xlu1 %v946_v32, %s2874_s30  ;;  %4862 = vst [vmem:[#allocation6_spill] sm:$0xff] %v3157_v21  ;;  %v721_v32 = vor.u32 %v720_v12, %v719_v11  ;;  %2573 = vmatpush3.bf16.msra.mxu0 %v1496_v41  ;;  %v822_v50 = vrot.slane %v3057_v38, 2  ;;  %v824_v54 = vrot.slane %v3106_v58, 2  ;;  %v826_v6 = vrot.slane %v3195_v55, 2 }
  0x35   : > { %v3169_v40 = vor.u32 %v692_v29, %v691_v27  ;;  %2615 = vmatpush3.bf16.msra.mxu1 %v1496_v41  ;;  %v976_v16 = vrot.slane %v3072_v43, 3  ;;  %v947_v28 = vrot.slane %v3132_v10, 2  ;;  %v948_v11 = vrot.slane %v3129_v8, 3 }
  0x36   : > { %v979_v18 = vrot.slane %v3140_v17, 2  ;;  %v3223_v27 = vshll.u32 %v3195_v55, 16  ;;  %v3226_v29 = vshrl.u32 %v3195_v55, 16 }
  0x37   : > { %1098 = vrot.lane.b32.xlu0 %v1063_v39, %s2875_s4  ;;  %v690_v39 = vsel %vm670_vm3, %v2993_v60, %v689_v2  ;;  %v694_v46 = vsel %vm670_vm3, %v689_v2, %v3169_v40  ;;  %v980_v2 = vrot.slane %v3137_v15, 3 }
  0x38   : > { %505 = vrot.lane.b32.xlu1 %v380_v33, %s2871_s23  ;;  %v722_v33 = vsel %vm670_vm3, %v3157_v21, %v721_v32 }
  0x3b   : > { %521 = vrot.lane.b32.xlu0 %v444_v44, %s2871_s23  ;;  %v3173_v44 = vor.u32 %v724_v35, %v723_v34  ;;  %v949_v35 = vor.u32 %v948_v11, %v947_v28  ;;  %v1082_v11 = vrot.slane %v3106_v58, 3 }
  0x3c   : > { %1100 = vrot.lane.b32.xlu1 %v1065_v48, %s2875_s4  ;;  %v4811_v48 = vrot.slane %v3026_v22, 2 }
  0x3d   : > { %v726_v60 = vsel %vm670_vm3, %v721_v32, %v3173_v44  ;;  %v3232_v32 = vsel %vm800_vm1, %v824_v54, %v826_v6 }
  0x3f   : > { %507 = vrot.lane.b32.xlu0 %v388_v37, %s2871_s23  ;;  %v808_v37 = vrot.slane %v3109_v59, 2 }
  0x40   : > { %523 = vrot.lane.b32.xlu1 %v452_v52, %s2871_s23  ;;  %v3189_v52 = vsel %vm800_vm1, %v4811_v48, %v822_v50 }
  0x41   : > { %4863 = vst [vmem:[#allocation7_spill] sm:$0xff] %v3189_v52 }
  0x43   : > { %582 = vrot.lane.b32.xlu0 %v2982_v49, %s2869_s21  ;;  %v566_v49 = vrot.slane %v3106_v58, 1  ;;  %v727_v58 = vrot.slane %v3226_v29, 1 }
  0x44   : > { %598 = vrot.lane.b32.xlu1 %v3100_v56, %s2869_s21 }
  0x45   : > { %v3149_v19 = vsel %vm540_vm0, %v564_v57, %v566_v49  ;;  %v3198_v57 = vld [vmem:[%s2922_s19 + $0x30] sm:$0xff]  }
  0x46   : > { %v810_v7 = vrot.slane %v3198_v57, 2  ;;  %v3218_v12 = vshrl.u32 %v3198_v57, 16  ;;  %v4819_v61 = vrot.slane %v3198_v57, 3 }
  0x47   : > { %584 = vrot.lane.b32.xlu0 %v549_v63, %s2869_s21 }
  0x48   : > { %600 = vrot.lane.b32.xlu1 %v565_v0, %s2869_s21  ;;  %v3238_v34 = vsel %vm800_vm1, %v808_v37, %v810_v7 }
  0x4b   : > { %635 = vrot.lane.b32.xlu0 %v549_v63, %s2868_s20  ;;  %v809_v63 = vsel %vm800_vm1, %v806_v13, %v808_v37  ;;  %v3215_v13 = vshll.u32 %v3198_v57, 16  ;;  %v950_v37 = vsel %vm930_vm4, %v3036_v25, %v949_v35  ;;  %v4810_v25 = vrot.slane %v3057_v38, 3 }
  0x4c   : > { %651 = vrot.lane.b32.xlu1 %v565_v0, %s2868_s20  ;;  %v825_v0 = vsel %vm800_vm1, %v822_v50, %v824_v54  ;;  %v984_v50 = vrot.slane %v3223_v27, 3 }
  0x4d   : > { %v952_v41 = vrot.slane %v3215_v13, 3 }
  0x4f   : > { %637 = vrot.lane.b32.xlu0 %v3154_v20, %s2868_s20 }
  0x50   : > { %653 = vrot.lane.b32.xlu1 %v3149_v19, %s2868_s20 }
  0x53   : > { %765 = vrot.lane.b32.xlu0 %v690_v39, %s2872_s28  ;;  %v951_v39 = vrot.slane %v3218_v12, 2 }
  0x54   : > { %781 = vrot.lane.b32.xlu1 %v722_v33, %s2872_s28 }
  0x55   : > { %v3252_v54 = vor.u32 %v952_v41, %v951_v39  ;;  %v1083_v39 = vsel %vm1060_vm5, %v4810_v25, %v1082_v11  ;;  %v455_v41 = vor.u32 %v3118_v1, %v451_v51  ;;  %v4818_v51 = vrot.slane %v3215_v13, 1 }
  0x57   : > { %767 = vrot.lane.b32.xlu0 %v694_v46, %s2872_s28  ;;  %v981_v46 = vor.u32 %v980_v2, %v979_v18  ;;  %v391_v2 = vor.u32 %v2999_v62, %v387_v47 }
  0x58   : > { %783 = vrot.lane.b32.xlu1 %v726_v60, %s2872_s28  ;;  %v983_v60 = vrot.slane %v3226_v29, 2 }
  0x5b   : > { %842 = vrot.lane.b32.xlu0 %v3034_v24, %s2870_s22  ;;  %v975_v24 = vrot.slane %v3118_v1, 2 }
  0x5c   : > { %858 = vrot.lane.b32.xlu1 %v3189_v52, %s2870_s22 }
  0x5d   : > { %v3242_v33 = vor.u32 %v976_v16, %v975_v24  ;;  %v954_v24 = vsel %vm930_vm4, %v949_v35, %v3252_v54  ;;  %v1066_v16 = vrot.slane %v3109_v59, 3  ;;  %v395_v35 = vrot.slane %v3129_v8, 1 }
  0x5f   : > { %844 = vrot.lane.b32.xlu0 %v809_v63, %s2870_s22  ;;  %4864 = vst [vmem:[#allocation8_spill] sm:$0xff] %v3242_v33  ;;  %v1067_v18 = vsel %vm1060_vm5, %v1064_v36, %v1066_v16  ;;  %v396_v45 = vsel %vm352_vm2, %v391_v2, %v395_v35  ;;  %v4817_v36 = vrot.slane %v3195_v55, 3  ;;  %v1069_v43 = vsel %vm1060_vm5, %v1066_v16, %v4819_v61 }
  0x60   : > { %860 = vrot.lane.b32.xlu1 %v825_v0, %s2870_s22  ;;  %v399_v47 = vor.u32 %v3132_v10, %v395_v35 }
  0x61   : > { %v1085_v1 = vsel %vm1060_vm5, %v1082_v11, %v4817_v36  ;;  %v695_v11 = vrot.slane %v3218_v12, 1 }
  0x63   : > { %895 = vrot.lane.b32.xlu0 %v809_v63, %s2873_s29  ;;  %v982_v63 = vsel %vm930_vm4, %v3242_v33, %v981_v46 }
  0x64   : > { %911 = vrot.lane.b32.xlu1 %v825_v0, %s2873_s29  ;;  %v3256_v0 = vor.u32 %v984_v50, %v983_v60  ;;  %v404_v60 = vsel %vm352_vm2, %v399_v47, %v4818_v51  ;;  %v568_v50 = vrot.slane %v3195_v55, 1 }
  0x66   : > { %v986_v28 = vsel %vm930_vm4, %v981_v46, %v3256_v0  ;;  %v459_v46 = vrot.slane %v3137_v15, 1  ;;  %v4816_v15 = vrot.slane %v3223_v27, 1  ;;  %v569_v16 = vsel %vm540_vm0, %v566_v49, %v568_v50 }
  0x67   : > { %897 = vrot.lane.b32.xlu0 %v3238_v34, %s2873_s29  ;;  %v728_v49 = vrot.slane %v3223_v27, 2 }
  0x68   : > { %913 = vrot.lane.b32.xlu1 %v3232_v32, %s2873_s29  ;;  %v460_v62 = vsel %vm352_vm2, %v455_v41, %v459_v46  ;;  %v463_v8 = vor.u32 %v3140_v17, %v459_v46  ;;  %v552_v17 = vrot.slane %v3198_v57, 1 }
  0x6a   : > { %v468_v10 = vsel %vm352_vm2, %v463_v8, %v4816_v15 }
  0x6b   : > { %1025 = vrot.lane.b32.xlu0 %v950_v37, %s2874_s30  ;;  %v3316_v37 = vld [vmem:[%s2922_s19 + $0x78] sm:$0xff]  }
  0x6c   : > { %1041 = vrot.lane.b32.xlu1 %v982_v63, %s2874_s30  ;;  %v3319_v63 = vld [vmem:[%s2922_s19 + $0x38] sm:$0xff]   ;;  %v3347_v2 = vshrl.u32 %v3316_v37, 16 }
  0x6d   : > { %v3336_v59 = vshll.u32 %v3319_v63, 16 }
  0x6e   : > { %v731_v47 = vrot.slane %v3347_v2, 1  ;;  %v987_v53 = vrot.slane %v3347_v2, 2 }
  0x6f   : > { %1027 = vrot.lane.b32.xlu0 %v954_v24, %s2874_s30  ;;  %v553_v24 = vsel %vm540_vm0, %v550_v5, %v552_v17  ;;  %v3339_v5 = vshrl.u32 %v3319_v63, 16  ;;  %v700_v46 = vrot.slane %v3336_v59, 2 }
  0x70   : > { %1043 = vrot.lane.b32.xlu1 %v986_v28, %s2874_s30  ;;  %v4814_v28 = vrot.slane %v3316_v37, 1 }
  0x71   : > { %v699_v41 = vrot.slane %v3339_v5, 1 }
  0x73   : > { %1102 = vrot.lane.b32.xlu0 %v1067_v18, %s2875_s4  ;;  %v3344_v18 = vshll.u32 %v3316_v37, 16 }
  0x74   : > { %1118 = vrot.lane.b32.xlu1 %v1083_v39, %s2875_s4 }
  0x75   : > { %v988_v30 = vrot.slane %v3344_v18, 3 }
  0x77   : > { %509 = vrot.lane.b32.xlu0 %v396_v45, %s2871_s23 }
  0x78   : > { %525 = vrot.lane.b32.xlu1 %v460_v62, %s2871_s23  ;;  %v3361_v62 = vsel %vm540_vm0, %v568_v50, %v4814_v28 }
  0x7b   : > { %1104 = vrot.lane.b32.xlu0 %v1069_v43, %s2875_s4  ;;  %v729_v43 = vor.u32 %v728_v49, %v727_v58 }
  0x7c   : > { %1120 = vrot.lane.b32.xlu1 %v1085_v1, %s2875_s4  ;;  %v732_v1 = vrot.slane %v3344_v18, 2 }
  0x7d   : > { %v730_v50 = vsel %vm670_vm3, %v3173_v44, %v729_v43  ;;  %v812_v44 = vrot.slane %v3319_v63, 2 }
  0x7f   : > { %511 = vrot.lane.b32.xlu0 %v404_v60, %s2871_s23 }
  0x80   : > { %527 = vrot.lane.b32.xlu1 %v468_v10, %s2871_s23  ;;  %v3371_v10 = vor.u32 %v700_v46, %v699_v41  ;;  %v828_v41 = vrot.slane %v3316_v37, 2 }
  0x83   : > { %586 = vrot.lane.b32.xlu0 %v3154_v20, %s2869_s21  ;;  %v4815_v20 = vrot.slane %v3319_v63, 1 }
  0x84   : > { %602 = vrot.lane.b32.xlu1 %v3149_v19, %s2869_s21  ;;  %v696_v19 = vrot.slane %v3215_v13, 2 }
  0x85   : > { %v3354_v35 = vsel %vm540_vm0, %v552_v17, %v4815_v20 }
  0x86   : > { %v697_v39 = vor.u32 %v696_v19, %v695_v11 }
  0x87   : > { %588 = vrot.lane.b32.xlu0 %v553_v24, %s2869_s21 }
  0x88   : > { %604 = vrot.lane.b32.xlu1 %v569_v16, %s2869_s21  ;;  %v698_v60 = vsel %vm670_vm3, %v3169_v40, %v697_v39  ;;  %v702_v11 = vsel %vm670_vm3, %v697_v39, %v3371_v10  ;;  %v3394_v39 = vld [vmem:[%s2922_s19 + $0x80] sm:$0xff]  }
  0x89   : > { %v3427_v28 = vshll.u32 %v3394_v39, 16 }
  0x8b   : > { %639 = vrot.lane.b32.xlu0 %v553_v24, %s2868_s20  ;;  %v3377_v24 = vor.u32 %v732_v1, %v731_v47  ;;  %v3397_v47 = vld [vmem:[%s2922_s19 + $0x40] sm:$0xff]  }
  0x8c   : > { %655 = vrot.lane.b32.xlu1 %v569_v16, %s2868_s20  ;;  %v3422_v25 = vshrl.u32 %v3397_v47, 16 }
  0x8d   : > { %v632_v45 = vpop.permute.xlu0 %631  ;;  %v734_v19 = vsel %vm670_vm3, %v729_v43, %v3377_v24  ;;  %v813_v43 = vsel %vm800_vm1, %v810_v7, %v812_v44  ;;  %v955_v7 = vrot.slane %v3339_v5, 2 }
  0x8e   : > { %v579_v8 = vpop.permute.xlu1 %578  ;;  %v959_v51 = vrot.slane %v3422_v25, 2 }
  0x8f   : > { %641 = vrot.lane.b32.xlu0 %v3354_v35, %s2868_s20 }
  0x90   : > { %657 = vrot.lane.b32.xlu1 %v3361_v62, %s2868_s20 }
  0x91   : > { %v3373_v17 = vpop.permute.xlu0 %838 }
  0x92   : > { %v581_v16 = vpop.permute.xlu1 %580 }
  0x93   : > { %769 = vrot.lane.b32.xlu0 %v698_v60, %s2872_s28 }
  0x94   : > { %785 = vrot.lane.b32.xlu1 %v730_v50, %s2872_s28 }
  0x95   : > { %v502_v40 = vpop.permute.xlu0 %501 }
  0x96   : > { %v634_v58 = vpop.permute.xlu1 %633  ;;  %v1136_v1 = vsel %vm1134_vm7, %v2941_v14, %v502_v40 }
  0x97   : > { %771 = vrot.lane.b32.xlu0 %v702_v11, %s2872_s28  ;;  %v4825_v11 = vrot.slane %v3397_v47, 2  ;;  %v1173_v14 = vsel %vm1171_vm8, %v1136_v1, %v579_v8  ;;  %v3430_v8 = vshrl.u32 %v3394_v39, 16 }
  0x98   : > { %787 = vrot.lane.b32.xlu1 %v734_v19, %s2872_s28  ;;  %v956_v19 = vrot.slane %v3336_v59, 3  ;;  %v1210_v1 = vsel %vm1208_vm9, %v1173_v14, %v632_v45 }
  0x99   : > { %v504_v49 = vpop.permute.xlu0 %503  ;;  %v3438_v20 = vsel %vm800_vm1, %v812_v44, %v4825_v11  ;;  %v991_v14 = vrot.slane %v3430_v8, 2  ;;  %v992_v44 = vrot.slane %v3427_v28, 3 }
  0x9a   : > { %v3389_v46 = vpop.permute.xlu1 %840  ;;  %v1138_v40 = vsel %vm1134_vm7, %v2936_v9, %v504_v49  ;;  %v957_v36 = vor.u32 %v956_v19, %v955_v7 }
  0x9b   : > { %846 = vrot.lane.b32.xlu0 %v3238_v34, %s2870_s22  ;;  %v829_v34 = vsel %vm800_vm1, %v826_v6, %v828_v41  ;;  %v3419_v6 = vshll.u32 %v3397_v47, 16  ;;  %v1175_v49 = vsel %vm1171_vm8, %v1138_v40, %v581_v16  ;;  %v3467_v40 = vor.u32 %v992_v44, %v991_v14 }
  0x9c   : > { %862 = vrot.lane.b32.xlu1 %v3232_v32, %s2870_s22  ;;  %v4824_v32 = vrot.slane %v3394_v39, 2 }
  0x9d   : > { %v762_v60 = vpop.permute.xlu0 %761  ;;  %v960_v61 = vrot.slane %v3419_v6, 3 }
  0x9e   : > { %v764_v50 = vpop.permute.xlu1 %763  ;;  %v1247_v15 = vsel %vm1245_vm10, %v1210_v1, %v762_v60  ;;  %v3447_v45 = vsel %vm800_vm1, %v828_v41, %v4824_v32  ;;  %v1212_v60 = vsel %vm1208_vm9, %v1175_v49, %v634_v58 }
  0x9f   : > { %848 = vrot.lane.b32.xlu0 %v813_v43, %s2870_s22  ;;  %v1284_v7 = vsel %vm1282_vm11, %v1247_v15, %v3373_v17  ;;  %v1249_v58 = vsel %vm1245_vm10, %v1212_v60, %v764_v50  ;;  %v4866_v60 = vrot.slane %v3215_v13, 1 }
  0xa0   : > { %864 = vrot.lane.b32.xlu1 %v829_v34, %s2870_s22 }
  0xa1   : > { %v892_v48 = vpop.permute.xlu0 %891 }
  0xa2   : > { %v894_v9 = vpop.permute.xlu1 %893  ;;  %v1321_v19 = vsel %vm1319_vm12, %v1284_v7, %v892_v48  ;;  %v411_v7 = vrot.slane %v3336_v59, 1 }
  0xa3   : > { %899 = vrot.lane.b32.xlu0 %v813_v43, %s2873_s29  ;;  %v989_v43 = vor.u32 %v988_v30, %v987_v53  ;;  %v958_v30 = vsel %vm930_vm4, %v3252_v54, %v957_v36  ;;  %v3461_v53 = vor.u32 %v960_v61, %v959_v51  ;;  %v1286_v54 = vsel %vm1282_vm11, %v1249_v58, %v3389_v46 }
  0xa4   : > { %915 = vrot.lane.b32.xlu1 %v829_v34, %s2873_s29  ;;  %v1323_v51 = vsel %vm1319_vm12, %v1286_v54, %v894_v9  ;;  %v4868_v58 = vrot.slane %v3223_v27, 1  ;;  %v4821_v27 = vrot.slane %v3394_v39, 3 }
  0xa5   : > { %v1022_v16 = vpop.permute.xlu0 %1021  ;;  %v990_v17 = vsel %vm930_vm4, %v3256_v0, %v989_v43  ;;  %v962_v61 = vsel %vm930_vm4, %v957_v36, %v3461_v53  ;;  %v1070_v0 = vrot.slane %v3319_v63, 3  ;;  %v994_v1 = vsel %vm930_vm4, %v989_v43, %v3467_v40 }
  0xa6   : > { %v1024_v34 = vpop.permute.xlu1 %1023  ;;  %v1358_v41 = vsel %vm1356_vm13, %v1321_v19, %v1022_v16  ;;  %v1086_v16 = vrot.slane %v3316_v37, 3  ;;  %v4865_v36 = vrot.slane %v3198_v57, 3  ;;  %v407_v43 = vor.u32 %v3218_v12, %v4866_v60  ;;  %v3558_v60 = vld [vmem:[%s2922_s19 + $0x88] sm:$0xff]  }
  0xa7   : > { %901 = vrot.lane.b32.xlu0 %v3438_v20, %s2873_s29  ;;  %v1360_v14 = vsel %vm1356_vm13, %v1323_v51, %v1024_v34  ;;  %v4867_v19 = vrot.slane %v3195_v55, 3  ;;  %v475_v57 = vrot.slane %v3344_v18, 1  ;;  %v4823_v12 = vrot.slane %v3397_v47, 3 }
  0xa8   : > { %917 = vrot.lane.b32.xlu1 %v3447_v45, %s2873_s29  ;;  %v1071_v9 = vsel %vm1060_vm5, %v4865_v36, %v1070_v0  ;;  %v412_v13 = vsel %vm352_vm2, %v407_v43, %v411_v7  ;;  %v415_v18 = vor.u32 %v3339_v5, %v411_v7  ;;  %v572_v36 = vrot.slane %v3394_v39, 1  ;;  %v3561_v43 = vld [vmem:[%s2922_s19 + $0x48] sm:$0xff]  }
  0xa9   : > { %v1099_v15 = vpop.permute.xlu0 %1098  ;;  %v479_v51 = vor.u32 %v3347_v2, %v475_v57  ;;  %v4869_v7 = vrot.slane %v3319_v63, 1  ;;  %v703_v63 = vrot.slane %v3422_v25, 1 }
  0xaa   : > { %v3469_v48 = vpop.permute.xlu1 %505  ;;  %v1395_v49 = vsel %vm1393_vm14, %v1358_v41, %v1099_v15  ;;  %v471_v41 = vor.u32 %v3226_v29, %v4868_v58  ;;  %v1073_v29 = vsel %vm1060_vm5, %v1070_v0, %v4823_v12  ;;  %v4870_v58 = vrot.slane %v3316_v37, 1 }
  0xab   : > { %1029 = vrot.lane.b32.xlu0 %v958_v30, %s2874_s30  ;;  %2574 = vmatprep.mubr.msk.bf16.mxu0 %vm1457_vm15, %v1395_v49  ;;  %v1087_v30 = vsel %vm1060_vm5, %v4867_v19, %v1086_v16  ;;  %v4822_v49 = vrot.slane %v3419_v6, 1  ;;  %v3587_v37 = vshrl.u32 %v3561_v43, 16 }
  0xac   : > { %1045 = vrot.lane.b32.xlu1 %v990_v17, %s2874_s30  ;;  %v476_v55 = vsel %vm352_vm2, %v471_v41, %v475_v57  ;;  %v573_v41 = vsel %vm540_vm0, %v4870_v58, %v572_v36 }
  0xad   : > { %v3481_v50 = vpop.permute.xlu0 %521  ;;  %v420_v5 = vsel %vm352_vm2, %v415_v18, %v4822_v49  ;;  %v735_v18 = vrot.slane %v3430_v8, 1 }
  0xae   : > { %v1101_v44 = vpop.permute.xlu1 %1100  ;;  %v1156_v52 = vsel %vm1134_vm7, %v3005_v3, %v3481_v50 }
  0xaf   : > { %v1397_v46 = vsel %vm1393_vm14, %v1360_v14, %v1101_v44  ;;  %1031 = vrot.lane.b32.xlu0 %v962_v61, %s2874_s30  ;;  %v1089_v61 = vsel %vm1060_vm5, %v1086_v16, %v4821_v27  ;;  %v556_v44 = vrot.slane %v3397_v47, 1 }
  0xb0   : > { %1047 = vrot.lane.b32.xlu1 %v994_v1, %s2874_s30  ;;  %2575 = vmatmul.mubr.msk.bf16.vlgmr.msra.gmra.mrb[0].mxu0 %vm1457_vm15, %v1397_v46  ;;  %v4820_v1 = vrot.slane %v3427_v28, 1 }
  0xb1   : > { %v3498_v34 = vpop.permute.xlu0 %507  ;;  %v557_v19 = vsel %vm540_vm0, %v4869_v7, %v556_v44 }
  0xb2   : > { %v3507_v15 = vpop.permute.xlu1 %523  ;;  %v484_v2 = vsel %vm352_vm2, %v479_v51, %v4820_v1  ;;  %v3594_v51 = vshll.u32 %v3558_v60, 16  ;;  %v707_v1 = vrot.slane %v3587_v37, 1 }
  0xb3   : > { %1106 = vrot.lane.b32.xlu0 %v1071_v9, %s2875_s4 }
  0xb4   : > { %1122 = vrot.lane.b32.xlu1 %v1087_v30, %s2875_s4  ;;  %v996_v42 = vrot.slane %v3594_v51, 3 }
  0xb5   : > { %v3513_v59 = vpop.permute.xlu0 %582 }
  0xb6   : > { %v3517_v17 = vpop.permute.xlu1 %598 }
  0xb7   : > { %513 = vrot.lane.b32.xlu0 %v412_v13, %s2871_s23  ;;  %v4826_v13 = vrot.slane %v3561_v43, 1  ;;  %v1193_v31 = vsel %vm1171_vm8, %v1156_v52, %v3517_v17  ;;  %v4875_v52 = vrot.slane %v3005_v3, 2 }
  0xb8   : > { %529 = vrot.lane.b32.xlu1 %v476_v55, %s2871_s23  ;;  %v3584_v55 = vshll.u32 %v3561_v43, 16 }
  0xb9   : > { %v3526_v54 = vpop.permute.xlu0 %584  ;;  %v3606_v7 = vsel %vm540_vm0, %v556_v44, %v4826_v13 }
  0xba   : > { %v3533_v14 = vpop.permute.xlu1 %600  ;;  %v708_v27 = vrot.slane %v3584_v55, 2  ;;  %v964_v21 = vrot.slane %v3584_v55, 3 }
  0xbb   : > { %1108 = vrot.lane.b32.xlu0 %v1073_v29, %s2875_s4 }
  0xbc   : > { %1124 = vrot.lane.b32.xlu1 %v1089_v61, %s2875_s4  ;;  %v736_v61 = vrot.slane %v3427_v28, 2 }
  0xbd   : > { %v3540_v0 = vpop.permute.xlu0 %635 }
  0xbe   : > { %v3545_v16 = vpop.permute.xlu1 %651  ;;  %v737_v32 = vor.u32 %v736_v61, %v735_v18 }
  0xbf   : > { %515 = vrot.lane.b32.xlu0 %v420_v5, %s2871_s23  ;;  %v3597_v5 = vshrl.u32 %v3558_v60, 16 }
  0xc0   : > { %531 = vrot.lane.b32.xlu1 %v484_v2, %s2871_s23 }
  0xc1   : > { %v3550_v46 = vpop.permute.xlu0 %637 }
  0xc2   : > { %v3553_v9 = vpop.permute.xlu1 %653 }
  0xc3   : > { %590 = vrot.lane.b32.xlu0 %v3354_v35, %s2869_s21  ;;  %v3577_v35 = vrot.slane %v3558_v60, 1 }
  0xc4   : > { %606 = vrot.lane.b32.xlu1 %v3361_v62, %s2869_s21  ;;  %v704_v62 = vrot.slane %v3419_v6, 2 }
  0xc5   : > { %v3568_v30 = vpop.permute.xlu0 %765  ;;  %v3612_v12 = vsel %vm540_vm0, %v572_v36, %v3577_v35 }
  0xc6   : > { %v3573_v57 = vpop.permute.xlu1 %781  ;;  %v705_v58 = vor.u32 %v704_v62, %v703_v63  ;;  %v3622_v63 = vor.u32 %v708_v27, %v707_v1  ;;  %v738_v62 = vsel %vm670_vm3, %v3377_v24, %v737_v32  ;;  %v816_v24 = vrot.slane %v3561_v43, 2 }
  0xc7   : > { %592 = vrot.lane.b32.xlu0 %v557_v19, %s2869_s21 }
  0xc8   : > { %608 = vrot.lane.b32.xlu1 %v573_v41, %s2869_s21  ;;  %v706_v44 = vsel %vm670_vm3, %v3371_v10, %v705_v58  ;;  %4871 = vst [vmem:[#allocation9_spill] sm:$0xff] %v3622_v63  ;;  %v710_v13 = vsel %vm670_vm3, %v705_v58, %v3622_v63  ;;  %v3694_v17 = vsel %vm800_vm1, %v816_v24, %v4875_v52 }
  0xc9   : > { %v3589_v29 = vpop.permute.xlu0 %767 }
  0xca   : > { %v3599_v2 = vpop.permute.xlu1 %783 }
  0xcb   : > { %643 = vrot.lane.b32.xlu0 %v557_v19, %s2868_s20  ;;  %v739_v19 = vrot.slane %v3597_v5, 1 }
  0xcc   : > { %659 = vrot.lane.b32.xlu1 %v573_v41, %s2868_s20  ;;  %v740_v41 = vrot.slane %v3594_v51, 2 }
  0xcd   : > { %v843_v49 = vpop.permute.xlu0 %842 }
  0xce   : > { %v859_v11 = vpop.permute.xlu1 %858  ;;  %v3628_v18 = vor.u32 %v740_v41, %v739_v19  ;;  %v832_v41 = vrot.slane %v3558_v60, 2 }
  0xcf   : > { %645 = vrot.lane.b32.xlu0 %v3606_v7, %s2868_s20 }
  0xd0   : > { %661 = vrot.lane.b32.xlu1 %v3612_v12, %s2868_s20  ;;  %4872 = vst [vmem:[#allocation10_spill] sm:$0xff] %v3628_v18  ;;  %v742_v27 = vsel %vm670_vm3, %v737_v32, %v3628_v18  ;;  %v4873_v32 = vrot.slane %v3397_v47, 2  ;;  %v1230_v18 = vsel %vm1208_vm9, %v1193_v31, %v3545_v16 }
  0xd1   : > { %v3624_v36 = vpop.permute.xlu0 %844 }
  0xd2   : > { %v3630_v61 = vpop.permute.xlu1 %860 }
  0xd3   : > { %773 = vrot.lane.b32.xlu0 %v706_v44, %s2872_s28  ;;  %v3645_v44 = vld [vmem:[%s2922_s19 + $0x90] sm:$0xff]  }
  0xd4   : > { %789 = vrot.lane.b32.xlu1 %v738_v62, %s2872_s28  ;;  %v3660_v33 = vrot.slane %v3645_v44, 2  ;;  %v4876_v31 = vshrl.u32 %v3645_v44, 16 }
  0xd5   : > { %v896_v10 = vpop.permute.xlu0 %895 }
  0xd6   : > { %v912_v1 = vpop.permute.xlu1 %911  ;;  %v999_v16 = vrot.slane %v4876_v31, 2 }
  0xd7   : > { %775 = vrot.lane.b32.xlu0 %v710_v13, %s2872_s28  ;;  %v817_v13 = vsel %vm800_vm1, %v4873_v32, %v816_v24  ;;  %v1140_v32 = vsel %vm1134_vm7, %v2931_v4, %v3469_v48  ;;  %v3684_v48 = vsel %vm800_vm1, %v832_v41, %v3660_v33  ;;  %v967_v24 = vrot.slane %v3041_v26, 2 }
  0xd8   : > { %791 = vrot.lane.b32.xlu1 %v742_v27, %s2872_s28  ;;  %v4874_v27 = vrot.slane %v3394_v39, 2  ;;  %v1177_v50 = vsel %vm1171_vm8, %v1140_v32, %v3513_v59 }
  0xd9   : > { %v3641_v19 = vpop.permute.xlu0 %897  ;;  %v1214_v63 = vsel %vm1208_vm9, %v1177_v50, %v3540_v0 }
  0xda   : > { %v3647_v62 = vpop.permute.xlu1 %913  ;;  %v833_v38 = vsel %vm800_vm1, %v4874_v27, %v832_v41  ;;  %v963_v27 = vrot.slane %v3587_v37, 2  ;;  %v1251_v59 = vsel %vm1245_vm10, %v1214_v63, %v3568_v30  ;;  %v1267_v41 = vsel %vm1245_vm10, %v1230_v18, %v3573_v57 }
  0xdb   : > { %850 = vrot.lane.b32.xlu0 %v3438_v20, %s2870_s22  ;;  %v1288_v50 = vsel %vm1282_vm11, %v1251_v59, %v843_v49  ;;  %v1304_v30 = vsel %vm1282_vm11, %v1267_v41, %v859_v11 }
  0xdc   : > { %866 = vrot.lane.b32.xlu1 %v3447_v45, %s2870_s22  ;;  %v995_v45 = vrot.slane %v3597_v5, 2  ;;  %v965_v56 = vor.u32 %v964_v21, %v963_v27  ;;  %v1325_v63 = vsel %vm1319_vm12, %v1288_v50, %v896_v10  ;;  %v1341_v57 = vsel %vm1319_vm12, %v1304_v30, %v912_v1 }
  0xdd   : > { %v1026_v58 = vpop.permute.xlu0 %1025 }
  0xde   : > { %v1042_v20 = vpop.permute.xlu1 %1041  ;;  %v997_v0 = vor.u32 %v996_v42, %v995_v45  ;;  %v968_v42 = vrot.slane %v3029_v23, 3  ;;  %v2831_v45 = vld [vmem:[%s2922_s19 + $0x18] sm:$0xff]   ;;  %v1362_v21 = vsel %vm1356_vm13, %v1325_v63, %v1026_v58  ;;  %v966_v1 = vsel %vm930_vm4, %v3461_v53, %v965_v56 }
  0xdf   : > { %852 = vrot.lane.b32.xlu0 %v817_v13, %s2870_s22  ;;  %v1142_v49 = vsel %vm1134_vm7, %v2831_v45, %v3498_v34  ;;  %v1378_v10 = vsel %vm1356_vm13, %v1341_v57, %v1042_v20  ;;  %v1158_v58 = vsel %vm1134_vm7, %v3026_v22, %v3507_v15 }
  0xe0   : > { %868 = vrot.lane.b32.xlu1 %v833_v38, %s2870_s22  ;;  %v1179_v20 = vsel %vm1171_vm8, %v1142_v49, %v3526_v54  ;;  %v3730_v59 = vor.u32 %v968_v42, %v967_v24  ;;  %v1195_v52 = vsel %vm1171_vm8, %v1158_v58, %v3533_v14  ;;  %v998_v15 = vsel %vm930_vm4, %v3467_v40, %v997_v0 }
  0xe1   : > { %v1028_v4 = vpop.permute.xlu0 %1027  ;;  %v1216_v53 = vsel %vm1208_vm9, %v1179_v20, %v3550_v46  ;;  %v1232_v54 = vsel %vm1208_vm9, %v1195_v52, %v3553_v9  ;;  %v427_v49 = vrot.slane %v3584_v55, 1 }
  0xe2   : > { %v1044_v32 = vpop.permute.xlu1 %1043  ;;  %v1253_v31 = vsel %vm1245_vm10, %v1216_v53, %v3589_v29  ;;  %v1269_v14 = vsel %vm1245_vm10, %v1232_v54, %v3599_v2  ;;  %v970_v9 = vsel %vm930_vm4, %v965_v56, %v3730_v59  ;;  %v1074_v29 = vrot.slane %v3561_v43, 3 }
  0xe3   : > { %903 = vrot.lane.b32.xlu0 %v817_v13, %s2873_s29  ;;  %v4877_v13 = vshll.u32 %v3645_v44, 16  ;;  %v1290_v46 = vsel %vm1282_vm11, %v1253_v31, %v3624_v36  ;;  %v1306_v40 = vsel %vm1282_vm11, %v1269_v14, %v3630_v61  ;;  %v1090_v61 = vrot.slane %v3558_v60, 3 }
  0xe4   : > { %919 = vrot.lane.b32.xlu1 %v833_v38, %s2873_s29  ;;  %v1343_v2 = vsel %vm1319_vm12, %v1306_v40, %v3647_v62  ;;  %v4878_v62 = vrot.slane %v3397_v47, 3  ;;  %v491_v47 = vrot.slane %v3594_v51, 1  ;;  %v4882_v54 = vrot.slane %v3029_v23, 1 }
  0xe5   : > { %v1103_v18 = vpop.permute.xlu0 %1102  ;;  %v1000_v11 = vrot.slane %v4877_v13, 3  ;;  %v4881_v13 = vrot.slane %v3427_v28, 1 }
  0xe6   : > { %v1119_v27 = vpop.permute.xlu1 %1118  ;;  %v1399_v38 = vsel %vm1393_vm14, %v1362_v21, %v1103_v18  ;;  %v4880_v21 = vrot.slane %v3394_v39, 3  ;;  %v495_v52 = vor.u32 %v3597_v5, %v491_v47 }
  0xe7   : > { %905 = vrot.lane.b32.xlu0 %v3694_v17, %s2873_s29  ;;  %2578 = vmatprep.mubr.msk.bf16.mxu0 %vm1457_vm15, %v1399_v38  ;;  %v1415_v34 = vsel %vm1393_vm14, %v1378_v10, %v1119_v27  ;;  %v3740_v50 = vor.u32 %v1000_v11, %v999_v16  ;;  %v1327_v16 = vsel %vm1319_vm12, %v1290_v46, %v3641_v19  ;;  %v2681_v10 = vld [vmem:[%s2922_s19 + $0x90] ss:$0 sps:$4 sm:$0x11]  }
  0xe8   : > { %921 = vrot.lane.b32.xlu1 %v3684_v48, %s2873_s29  ;;  %2594 = vmatprep.mubr.msk.bf16.mxu1 %vm1457_vm15, %v1415_v34  ;;  %v1364_v36 = vsel %vm1356_vm13, %v1327_v16, %v1028_v4  ;;  %v1380_v19 = vsel %vm1356_vm13, %v1343_v2, %v1044_v32  ;;  %v1075_v4 = vsel %vm1060_vm5, %v4878_v62, %v1074_v29  ;;  %v4879_v32 = vrot.slane %v3419_v6, 1  ;;  %v3797_v6 = vld [vmem:[%s2922_s19 + $0x50] sm:$0xff]  }
  0xe9   : > { %v3736_v41 = vpop.permute.xlu0 %509  ;;  %v1002_v24 = vsel %vm930_vm4, %v997_v0, %v3740_v50  ;;  %v1091_v18 = vsel %vm1060_vm5, %v4880_v21, %v1090_v61  ;;  %v487_v11 = vor.u32 %v3430_v8, %v4881_v13  ;;  %v1076_v39 = vrot.slane %v3797_v6, 3 }
  0xea   : > { %v3746_v30 = vpop.permute.xlu1 %525  ;;  %v423_v0 = vor.u32 %v3422_v25, %v4879_v32  ;;  %v1092_v8 = vrot.slane %v3645_v44, 3  ;;  %v497_v51 = vshll.u32 %v2681_v10, 16  ;;  %v576_v40 = vrot.slane %v2681_v10, 1 }
  0xeb   : > { %1033 = vrot.lane.b32.xlu0 %v966_v1, %s2874_s30  ;;  %v492_v28 = vsel %vm352_vm2, %v487_v11, %v491_v47  ;;  %v1077_v34 = vsel %vm1060_vm5, %v1074_v29, %v1076_v39  ;;  %v431_v1 = vor.u32 %v3587_v37, %v427_v49  ;;  %v4884_v29 = vrot.slane %v3561_v43, 1 }
  0xec   : > { %1049 = vrot.lane.b32.xlu1 %v998_v15, %s2874_s30  ;;  %v428_v25 = vsel %vm352_vm2, %v423_v0, %v427_v49  ;;  %v1093_v20 = vsel %vm1060_vm5, %v1090_v61, %v1092_v8  ;;  %v499_v53 = vrot.slane %v497_v51, 1  ;;  %v577_v61 = vsel %vm540_vm0, %v3577_v35, %v576_v40  ;;  %v4888_v51 = vld [vmem:[#allocation9_spill] sm:$0xff] }
  0xed   : > { %v1105_v63 = vpop.permute.xlu0 %1104  ;;  %v436_v37 = vsel %vm352_vm2, %v431_v1, %v4882_v54  ;;  %v4886_v0 = vshll.u32 %v3645_v44, 16 }
  0xee   : > { %v1121_v42 = vpop.permute.xlu1 %1120  ;;  %v1401_v45 = vsel %vm1393_vm14, %v1364_v36, %v1105_v63  ;;  %v500_v14 = vsel %vm352_vm2, %v495_v52, %v499_v53  ;;  %v627_v36 = vrot.slane %v3645_v44, 1  ;;  %v2682_v63 = vld [vmem:[%s2922_s19 + $0x98] ss:$0 sps:$4 sm:$0x11]  }
  0xef   : > { %v1417_v56 = vsel %vm1393_vm14, %v1380_v19, %v1121_v42  ;;  %1035 = vrot.lane.b32.xlu0 %v970_v9, %s2874_s30  ;;  %2579 = vmatmul.mubr.msk.bf16.gmra.mrb[4].mxu0 %vm1457_vm15, %v1401_v45  ;;  %v4883_v9 = vrot.slane %v3005_v3, 1  ;;  %v2683_v19 = vld [vmem:[%s2922_s19 + $0x98] ss:$0 sps:$4 sm:$0x33]   ;;  %v711_v45 = vrot.slane %v3041_v26, 1  ;;  %v749_v49 = vrot.slane %v4886_v0, 2 }
  0xf0   : > { %1051 = vrot.lane.b32.xlu1 %v1002_v24, %s2874_s30  ;;  %2595 = vmatmul.mubr.msk.bf16.vlgmr.msra.gmra.mrb[0].mxu1 %vm1457_vm15, %v1417_v56  ;;  %v712_v56 = vrot.slane %v3029_v23, 2  ;;  %v753_v21 = vshrl.u32 %v2683_v19, 16  ;;  %v2833_v0 = vld [vmem:[%s2922_s19 + $0x20] sm:$0xff]  }
  0xf1   : > { %v3781_v57 = vpop.permute.xlu0 %511  ;;  %v561_v2 = vsel %vm540_vm0, %v4884_v29, %v4883_v9 }
  0xf2   : > { %v3791_v27 = vpop.permute.xlu1 %527  ;;  %v755_v47 = vrot.slane %v753_v21, 1 }
  0xf3   : > { %1110 = vrot.lane.b32.xlu0 %v1075_v4, %s2875_s4  ;;  %v4885_v4 = vshrl.u32 %v3645_v44, 16 }
  0xf4   : > { %1126 = vrot.lane.b32.xlu1 %v1091_v18, %s2875_s4  ;;  %v756_v18 = vshll.u32 %v2683_v19, 16 }
  0xf5   : > { %v3800_v55 = vpop.permute.xlu0 %586  ;;  %v746_v32 = vrot.slane %v4885_v4, 1 }
  0xf6   : > { %v3804_v38 = vpop.permute.xlu1 %602  ;;  %v758_v10 = vrot.slane %v756_v18, 2 }
  0xf7   : > { %517 = vrot.lane.b32.xlu0 %v428_v25, %s2871_s23  ;;  %v750_v11 = vor.u32 %v749_v49, %v746_v32  ;;  %v3909_v32 = vld [vmem:[%s2922_s19 + $0xa0] ss:$0 sps:$4 sm:$0x77]  }
  0xf8   : > { %533 = vrot.lane.b32.xlu1 %v492_v28, %s2871_s23  ;;  %v4887_v28 = vld [vmem:[#allocation5_spill] sm:$0xff]  ;;  %v759_v53 = vor.u32 %v758_v10, %v755_v47  ;;  %v2834_v47 = vld [vmem:[%s2922_s19 + $0x60] sm:$0xff]  }
  0xf9   : > { %v3812_v58 = vpop.permute.xlu0 %588  ;;  %v1160_v10 = vsel %vm1134_vm7, %v2834_v47, %v3746_v30  ;;  %v2837_v47 = vld [vmem:[%s2922_s19 + $0x58] sm:$0xff]  }
  0xfa   : > { %v3818_v15 = vpop.permute.xlu1 %604  ;;  %v760_v9 = vsel %vm670_vm3, %v750_v11, %v759_v53 }
  0xfb   : > { %1112 = vrot.lane.b32.xlu0 %v1077_v34, %s2875_s4 }
  0xfc   : > { %1128 = vrot.lane.b32.xlu1 %v1093_v20, %s2875_s4  ;;  %v4889_v20 = vld [vmem:[#allocation10_spill] sm:$0xff] }
  0xfd   : > { %v3825_v31 = vpop.permute.xlu0 %639  ;;  %v751_v52 = vsel %vm670_vm3, %v4889_v20, %v750_v11  ;;  %v1197_v20 = vsel %vm1171_vm8, %v1160_v10, %v3804_v38  ;;  %v1078_v10 = vrot.slane %v2837_v47, 3 }
  0xfe   : > { %v3828_v46 = vpop.permute.xlu1 %655 }
  0xff   : > { %519 = vrot.lane.b32.xlu0 %v436_v37, %s2871_s23  ;;  %v4890_v37 = vld [vmem:[#allocation6_spill] sm:$0xff] }
 0x100   : > { %535 = vrot.lane.b32.xlu1 %v500_v14, %s2871_s23 }
 0x101   : > { %v3832_v5 = vpop.permute.xlu0 %641 }
 0x102   : > { %v3834_v16 = vpop.permute.xlu1 %657 }
 0x103   : > { %594 = vrot.lane.b32.xlu0 %v3606_v7, %s2869_s21  ;;  %v629_v7 = vrot.slane %v2682_v63, 1  ;;  %v3892_v63 = vld [vmem:[%s2922_s19 + $0x98] sm:$0xff]  }
 0x104   : > { %610 = vrot.lane.b32.xlu1 %v3612_v12, %s2869_s21  ;;  %v628_v12 = vsel %vm540_vm0, %v3577_v35, %v627_v36  ;;  %v713_v35 = vor.u32 %v712_v56, %v711_v45  ;;  %v1007_v45 = vshll.u32 %v3892_v63, 16  ;;  %v4891_v56 = vrot.slane %v3026_v22, 2 }
 0x105   : > { %v3847_v24 = vpop.permute.xlu0 %769  ;;  %v630_v23 = vsel %vm540_vm0, %v627_v36, %v629_v7  ;;  %v836_v36 = vrot.slane %v2683_v19, 2  ;;  %v1004_v7 = vshrl.u32 %v3892_v63, 16  ;;  %v4892_v19 = vrot.slane %v3005_v3, 2 }
 0x106   : > { %v3852_v42 = vpop.permute.xlu1 %785  ;;  %v714_v34 = vsel %vm670_vm3, %v4888_v51, %v713_v35  ;;  %v718_v14 = vsel %vm670_vm3, %v713_v35, %v4890_v37  ;;  %v887_v18 = vrot.slane %v3892_v63, 2  ;;  %v1009_v3 = vrot.slane %v1007_v45, 3  ;;  %v2835_v45 = vld [vmem:[%s2922_s19 + $0x28] sm:$0xff]  }
 0x107   : > { %596 = vrot.lane.b32.xlu0 %v561_v2, %s2869_s21  ;;  %v821_v4 = vsel %vm800_vm1, %v4892_v19, %v4891_v56  ;;  %v837_v21 = vsel %vm800_vm1, %v3660_v33, %v836_v36  ;;  %v1016_v37 = vshll.u32 %v3909_v32, 16  ;;  %vm2359_vm0 = vcmask 523264  }
 0x108   : > { %612 = vrot.lane.b32.xlu1 %v577_v61, %s2869_s21  ;;  %v888_v30 = vsel %vm800_vm1, %v3660_v33, %v887_v18 }
 0x109   : > { %v3860_v62 = vpop.permute.xlu0 %771 }
 0x10a   : > { %v3866_v13 = vpop.permute.xlu1 %787 }
 0x10b   : > { %647 = vrot.lane.b32.xlu0 %v561_v2, %s2868_s20 }
 0x10c   : > { %663 = vrot.lane.b32.xlu1 %v628_v12, %s2868_s20  ;;  %v2685_v12 = vld [vmem:[%s2922_s19 + $0xa0] ss:$0 sps:$4 sm:$0x33]  }
 0x10d   : > { %v847_v26 = vpop.permute.xlu0 %846  ;;  %v889_v22 = vrot.slane %v2685_v12, 2 }
 0x10e   : > { %v863_v25 = vpop.permute.xlu1 %862 }
 0x10f   : > { %649 = vrot.lane.b32.xlu0 %v4887_v28, %s2868_s20  ;;  %v4894_v28 = vld [vmem:[#allocation2_spill] sm:$0xff] }
 0x110   : > { %665 = vrot.lane.b32.xlu1 %v630_v23, %s2868_s20  ;;  %v4893_v23 = vld [vmem:[#allocation4_spill] sm:$0xff]  ;;  %v972_v51 = vrot.slane %v4894_v28, 3 }
 0x111   : > { %v3876_v1 = vpop.permute.xlu0 %848  ;;  %v971_v11 = vrot.slane %v4893_v23, 2 }
 0x112   : > { %v3880_v54 = vpop.permute.xlu1 %864 }
 0x113   : > { %777 = vrot.lane.b32.xlu0 %v714_v34, %s2872_s28  ;;  %v1013_v34 = vshrl.u32 %v3909_v32, 16 }
 0x114   : > { %793 = vrot.lane.b32.xlu1 %v751_v52, %s2872_s28 }
 0x115   : > { %v900_v40 = vpop.permute.xlu0 %899 }
 0x116   : > { %v916_v29 = vpop.permute.xlu1 %915 }
 0x117   : > { %779 = vrot.lane.b32.xlu0 %v718_v14, %s2872_s28 }
 0x118   : > { %795 = vrot.lane.b32.xlu1 %v760_v9, %s2872_s28 }
 0x119   : > { %v3889_v2 = vpop.permute.xlu0 %901 }
 0x11a   : > { %v3894_v61 = vpop.permute.xlu1 %917 }
 0x11b   : > { %854 = vrot.lane.b32.xlu0 %v3694_v17, %s2870_s22  ;;  %v1144_v17 = vsel %vm1134_vm7, %v2833_v0, %v3736_v41 }
 0x11c   : > { %870 = vrot.lane.b32.xlu1 %v3684_v48, %s2870_s22  ;;  %v1006_v48 = vrot.slane %v1004_v7, 2  ;;  %v1181_v41 = vsel %vm1171_vm8, %v1144_v17, %v3800_v55  ;;  %v1234_v55 = vsel %vm1208_vm9, %v1197_v20, %v3828_v46  ;;  %v973_v46 = vor.u32 %v972_v51, %v971_v11 }
 0x11d   : > { %v1030_v49 = vpop.permute.xlu0 %1029  ;;  %v1218_v52 = vsel %vm1208_vm9, %v1181_v41, %v3825_v31  ;;  %v1271_v38 = vsel %vm1245_vm10, %v1234_v55, %v3852_v42  ;;  %v890_v31 = vsel %vm800_vm1, %v887_v18, %v889_v22  ;;  %v1146_v42 = vsel %vm1134_vm7, %v2835_v45, %v3781_v57  ;;  %v2836_v18 = vld [vmem:[%s2922_s19 + $0x68] sm:$0xff]  }
 0x11e   : > { %v1046_v35 = vpop.permute.xlu1 %1045  ;;  %v1255_v14 = vsel %vm1245_vm10, %v1218_v52, %v3847_v24  ;;  %v1010_v12 = vor.u32 %v1009_v3, %v1006_v48  ;;  %v1308_v33 = vsel %vm1282_vm11, %v1271_v38, %v863_v25  ;;  %v1015_v24 = vrot.slane %v1013_v34, 2 }
 0x11f   : > { %856 = vrot.lane.b32.xlu0 %v821_v4, %s2870_s22  ;;  %v1292_v36 = vsel %vm1282_vm11, %v1255_v14, %v847_v26  ;;  %v1345_v26 = vsel %vm1319_vm12, %v1308_v33, %v916_v29  ;;  %v1162_v57 = vsel %vm1134_vm7, %v2836_v18, %v3791_v27  ;;  %v1183_v29 = vsel %vm1171_vm8, %v1146_v42, %v3812_v58  ;;  %v2839_v18 = vld [vmem:[%s2922_s19 + $0x70] sm:$0xff]  }
 0x120   : > { %872 = vrot.lane.b32.xlu1 %v837_v21, %s2870_s22  ;;  %v1329_v7 = vsel %vm1319_vm12, %v1292_v36, %v900_v40  ;;  %v1382_v0 = vsel %vm1356_vm13, %v1345_v26, %v1046_v35  ;;  %v4895_v21 = vld [vmem:[#allocation7_spill] sm:$0xff]  ;;  %v1199_v35 = vsel %vm1171_vm8, %v1162_v57, %v3818_v15  ;;  %v1220_v22 = vsel %vm1208_vm9, %v1183_v29, %v3832_v5 }
 0x121   : > { %v1032_v53 = vpop.permute.xlu0 %1031  ;;  %v1366_v56 = vsel %vm1356_vm13, %v1329_v7, %v1030_v49  ;;  %v974_v49 = vsel %vm930_vm4, %v3730_v59, %v973_v46  ;;  %v1011_v27 = vsel %vm930_vm4, %v3740_v50, %v1010_v12  ;;  %v1236_v58 = vsel %vm1208_vm9, %v1199_v35, %v3834_v16  ;;  %v4896_v16 = vld [vmem:[#allocation8_spill] sm:$0xff] }
 0x122   : > { %v1048_v9 = vpop.permute.xlu1 %1047  ;;  %v1257_v23 = vsel %vm1245_vm10, %v1220_v22, %v3860_v62  ;;  %v1273_v59 = vsel %vm1245_vm10, %v1236_v58, %v3866_v13  ;;  %v978_v62 = vsel %vm930_vm4, %v973_v46, %v4896_v16 }
 0x123   : > { %907 = vrot.lane.b32.xlu0 %v821_v4, %s2873_s29  ;;  %v1018_v4 = vrot.slane %v1016_v37, 3  ;;  %v1294_v15 = vsel %vm1282_vm11, %v1257_v23, %v3876_v1  ;;  %v1310_v5 = vsel %vm1282_vm11, %v1273_v59, %v3880_v54  ;;  %v1094_v54 = vrot.slane %v3892_v63, 3  ;;  %v4897_v37 = vld [vmem:[#allocation3_spill] sm:$0xff] }
 0x124   : > { %923 = vrot.lane.b32.xlu1 %v888_v30, %s2873_s29  ;;  %v1331_v50 = vsel %vm1319_vm12, %v1294_v15, %v3889_v2  ;;  %v1347_v13 = vsel %vm1319_vm12, %v1310_v5, %v3894_v61  ;;  %v1079_v61 = vsel %vm1060_vm5, %v1076_v39, %v1078_v10  ;;  %v4898_v55 = vrot.slane %v4897_v37, 3  ;;  %v2840_v15 = vld [vmem:[%s2922_s19 + $0x38] sm:$0xff]  }
 0x125   : > { %v1107_v19 = vpop.permute.xlu0 %1106  ;;  %v1019_v3 = vor.u32 %v1018_v4, %v1015_v24  ;;  %v1368_v1 = vsel %vm1356_vm13, %v1331_v50, %v1032_v53  ;;  %v1384_v51 = vsel %vm1356_vm13, %v1347_v13, %v1048_v9  ;;  %v1095_v52 = vsel %vm1060_vm5, %v1092_v8, %v1094_v54 }
 0x126   : > { %v1123_v25 = vpop.permute.xlu1 %1122  ;;  %v1403_v40 = vsel %vm1393_vm14, %v1366_v56, %v1107_v19  ;;  %v1096_v53 = vrot.slane %v3909_v32, 3  ;;  %v1081_v14 = vsel %vm1060_vm5, %v1078_v10, %v4898_v55 }
 0x127   : > { %v1419_v17 = vsel %vm1393_vm14, %v1382_v0, %v1123_v25  ;;  %909 = vrot.lane.b32.xlu0 %v4895_v21, %s2873_s29  ;;  %2582 = vmatprep.mubr.msk.bf16.mxu0 %vm1457_vm15, %v1403_v40  ;;  %v1020_v28 = vsel %vm930_vm4, %v1010_v12, %v1019_v3  ;;  %v2838_v25 = vld [vmem:[%s2922_s19 + $0x30] sm:$0xff]  }
 0x128   : > { %925 = vrot.lane.b32.xlu1 %v890_v31, %s2873_s29  ;;  %2598 = vmatprep.mubr.msk.bf16.mxu1 %vm1457_vm15, %v1419_v17  ;;  %v1097_v6 = vsel %vm1060_vm5, %v1094_v54, %v1096_v53 }
 0x129   : > { %v514_v48 = vpop.permute.xlu0 %513 }
 0x12a   : > { %v530_v11 = vpop.permute.xlu1 %529  ;;  %v1148_v40 = vsel %vm1134_vm7, %v2838_v25, %v514_v48 }
 0x12b   : > { %1037 = vrot.lane.b32.xlu0 %v974_v49, %s2874_s30  ;;  %v1164_v57 = vsel %vm1134_vm7, %v2839_v18, %v530_v11 }
 0x12c   : > { %1053 = vrot.lane.b32.xlu1 %v1011_v27, %s2874_s30 }
 0x12d   : > { %v1109_v41 = vpop.permute.xlu0 %1108 }
 0x12e   : > { %v1125_v2 = vpop.permute.xlu1 %1124  ;;  %v1405_v34 = vsel %vm1393_vm14, %v1368_v1, %v1109_v41  ;;  %v2841_v41 = vld [vmem:[%s2922_s19 + $0x78] sm:$0xff]  }
 0x12f   : > { %v1421_v20 = vsel %vm1393_vm14, %v1384_v51, %v1125_v2  ;;  %1039 = vrot.lane.b32.xlu0 %v978_v62, %s2874_s30  ;;  %2583 = vmatmul.mubr.msk.bf16.gmra.mrb[8].mxu0 %vm1457_vm15, %v1405_v34 }
 0x130   : > { %1055 = vrot.lane.b32.xlu1 %v1020_v28, %s2874_s30  ;;  %2599 = vmatmul.mubr.msk.bf16.gmra.mrb[4].mxu1 %vm1457_vm15, %v1421_v20 }
 0x131   : > { %v516_v63 = vpop.permute.xlu0 %515 }
 0x132   : > { %v532_v30 = vpop.permute.xlu1 %531  ;;  %v1150_v5 = vsel %vm1134_vm7, %v2840_v15, %v516_v63 }
 0x133   : > { %1114 = vrot.lane.b32.xlu0 %v1079_v61, %s2875_s4  ;;  %v1166_v28 = vsel %vm1134_vm7, %v2841_v41, %v532_v30 }
 0x134   : > { %1130 = vrot.lane.b32.xlu1 %v1095_v52, %s2875_s4 }
 0x135   : > { %v591_v9 = vpop.permute.xlu0 %590 }
 0x136   : > { %v607_v39 = vpop.permute.xlu1 %606  ;;  %v1185_v29 = vsel %vm1171_vm8, %v1148_v40, %v591_v9 }
 0x137   : > { %1116 = vrot.lane.b32.xlu0 %v1081_v14, %s2875_s4  ;;  %v1201_v49 = vsel %vm1171_vm8, %v1164_v57, %v607_v39 }
 0x138   : > { %1132 = vrot.lane.b32.xlu1 %v1097_v6, %s2875_s4 }
 0x139   : > { %v593_v44 = vpop.permute.xlu0 %592 }
 0x13a   : > { %v609_v8 = vpop.permute.xlu1 %608  ;;  %v1187_v54 = vsel %vm1171_vm8, %v1150_v5, %v593_v44 }
 0x13b   : > { %v1203_v51 = vsel %vm1171_vm8, %v1166_v28, %v609_v8 }
 0x13d   : > { %v644_v32 = vpop.permute.xlu0 %643 }
 0x13e   : > { %v660_v38 = vpop.permute.xlu1 %659  ;;  %v1222_v35 = vsel %vm1208_vm9, %v1185_v29, %v644_v32 }
 0x13f   : > { %v1238_v27 = vsel %vm1208_vm9, %v1201_v49, %v660_v38 }
 0x141   : > { %v646_v36 = vpop.permute.xlu0 %645 }
 0x142   : > { %v662_v31 = vpop.permute.xlu1 %661  ;;  %v1224_v2 = vsel %vm1208_vm9, %v1187_v54, %v646_v36 }
 0x143   : > { %v1240_v20 = vsel %vm1208_vm9, %v1203_v51, %v662_v31 }
 0x145   : > { %v774_v12 = vpop.permute.xlu0 %773 }
 0x146   : > { %v790_v33 = vpop.permute.xlu1 %789  ;;  %v1259_v3 = vsel %vm1245_vm10, %v1222_v35, %v774_v12 }
 0x147   : > { %v1275_v48 = vsel %vm1245_vm10, %v1238_v27, %v790_v33 }
 0x149   : > { %v776_v7 = vpop.permute.xlu0 %775 }
 0x14a   : > { %v792_v46 = vpop.permute.xlu1 %791  ;;  %v1261_v61 = vsel %vm1245_vm10, %v1224_v2, %v776_v7 }
 0x14b   : > { %v1277_v52 = vsel %vm1245_vm10, %v1240_v20, %v792_v46 }
 0x14d   : > { %v851_v24 = vpop.permute.xlu0 %850 }
 0x14e   : > { %v867_v45 = vpop.permute.xlu1 %866  ;;  %v1296_v23 = vsel %vm1282_vm11, %v1259_v3, %v851_v24 }
 0x14f   : > { %v1312_v59 = vsel %vm1282_vm11, %v1275_v48, %v867_v45  ;;  %v4059_v45 = vld [vmem:[%s4808_s2] ss:$0 sm:$0xff] }
 0x151   : > { %v853_v42 = vpop.permute.xlu0 %852 }
 0x152   : > { %v869_v26 = vpop.permute.xlu1 %868  ;;  %v1298_v53 = vsel %vm1282_vm11, %v1261_v61, %v853_v42 }
 0x153   : > { %v1314_v30 = vsel %vm1282_vm11, %v1277_v52, %v869_v26 }
 0x155   : > { %v904_v56 = vpop.permute.xlu0 %903 }
 0x156   : > { %v920_v19 = vpop.permute.xlu1 %919  ;;  %v1333_v11 = vsel %vm1319_vm12, %v1296_v23, %v904_v56 }
 0x157   : > { %v1349_v50 = vsel %vm1319_vm12, %v1312_v59, %v920_v19 }
 0x159   : > { %v906_v4 = vpop.permute.xlu0 %905 }
 0x15a   : > { %v922_v0 = vpop.permute.xlu1 %921  ;;  %v1335_v37 = vsel %vm1319_vm12, %v1298_v53, %v906_v4 }
 0x15b   : > { %v1351_v55 = vsel %vm1319_vm12, %v1314_v30, %v922_v0 }
 0x15d   : > { %v1034_v17 = vpop.permute.xlu0 %1033 }
 0x15e   : > { %v1050_v21 = vpop.permute.xlu1 %1049  ;;  %v1370_v16 = vsel %vm1356_vm13, %v1333_v11, %v1034_v17 }
 0x15f   : > { %v1386_v47 = vsel %vm1356_vm13, %v1349_v50, %v1050_v21  ;;  %v2842_v50 = vld [vmem:[%s2922_s19 + $0x40] sm:$0xff]  }
 0x161   : > { %v1036_v22 = vpop.permute.xlu0 %1035 }
 0x162   : > { %v1052_v58 = vpop.permute.xlu1 %1051  ;;  %v1372_v14 = vsel %vm1356_vm13, %v1335_v37, %v1036_v22 }
 0x163   : > { %v1388_v6 = vsel %vm1356_vm13, %v1351_v55, %v1052_v58 }
 0x165   : > { %v1111_v62 = vpop.permute.xlu0 %1110 }
 0x166   : > { %v1127_v10 = vpop.permute.xlu1 %1126  ;;  %v1407_v13 = vsel %vm1393_vm14, %v1370_v16, %v1111_v62 }
 0x167   : > { %v1423_v1 = vsel %vm1393_vm14, %v1386_v47, %v1127_v10  ;;  %2586 = vmatprep.mubr.msk.bf16.mxu0 %vm1457_vm15, %v1407_v13  ;;  %v2843_v10 = vld [vmem:[%s2922_s19 + $0x80] sm:$0xff]  }
 0x168   : > { %2602 = vmatprep.mubr.msk.bf16.mxu1 %vm1457_vm15, %v1423_v1 }
 0x169   : > { %v518_v34 = vpop.permute.xlu0 %517 }
 0x16a   : > { %v534_v63 = vpop.permute.xlu1 %533  ;;  %v1152_v16 = vsel %vm1134_vm7, %v2842_v50, %v518_v34 }
 0x16b   : > { %v1168_v13 = vsel %vm1134_vm7, %v2843_v10, %v534_v63 }
 0x16d   : > { %v1113_v9 = vpop.permute.xlu0 %1112 }
 0x16e   : > { %v1129_v39 = vpop.permute.xlu1 %1128  ;;  %v1409_v44 = vsel %vm1393_vm14, %v1372_v14, %v1113_v9 }
 0x16f   : > { %v1425_v8 = vsel %vm1393_vm14, %v1388_v6, %v1129_v39  ;;  %2587 = vmatmul.mubr.msk.bf16.gmra.mrb[12].mxu0 %vm1457_vm15, %v1409_v44 }
 0x170   : > { %2603 = vmatmul.mubr.msk.bf16.gmra.mrb[8].mxu1 %vm1457_vm15, %v1425_v8 }
 0x171   : > { %v520_v32 = vpop.permute.xlu0 %519 }
 0x172   : > { %v536_v38 = vpop.permute.xlu1 %535  ;;  %v1154_v41 = vsel %vm1134_vm7, %v3561_v43, %v520_v32 }
 0x173   : > { %v1170_v63 = vsel %vm1134_vm7, %v3558_v60, %v536_v38 }
 0x175   : > { %v595_v36 = vpop.permute.xlu0 %594 }
 0x176   : > { %v611_v31 = vpop.permute.xlu1 %610  ;;  %v1189_v1 = vsel %vm1171_vm8, %v1152_v16, %v595_v36 }
 0x177   : > { %v1205_v28 = vsel %vm1171_vm8, %v1168_v13, %v611_v31 }
 0x179   : > { %v597_v12 = vpop.permute.xlu0 %596 }
 0x17a   : > { %v613_v33 = vpop.permute.xlu1 %612  ;;  %v1191_v53 = vsel %vm1171_vm8, %v1154_v41, %v597_v12 }
 0x17b   : > { %v1207_v37 = vsel %vm1171_vm8, %v1170_v63, %v613_v33 }
 0x17d   : > { %v648_v7 = vpop.permute.xlu0 %647 }
 0x17e   : > { %v664_v46 = vpop.permute.xlu1 %663  ;;  %v1226_v54 = vsel %vm1208_vm9, %v1189_v1, %v648_v7 }
 0x17f   : > { %v1242_v2 = vsel %vm1208_vm9, %v1205_v28, %v664_v46 }
 0x181   : > { %v650_v24 = vpop.permute.xlu0 %649 }
 0x182   : > { %v666_v42 = vpop.permute.xlu1 %665  ;;  %v1228_v55 = vsel %vm1208_vm9, %v1191_v53, %v650_v24 }
 0x183   : > { %v2576_v26 = vpop.f32.mrb[0].mxu0  ;;  %v1244_v39 = vsel %vm1208_vm9, %v1207_v37, %v666_v42 }
 0x184   : > { %v1541_v56 = vadd.f32 %v2576_v26, %v4059_v45  ;;  %v4062_v19 = vpop.f32.mrb[1].mxu0 }
 0x185   : > { %v2577_v4 = vpop.f32.mrb[2].mxu0  ;;  %v778_v0 = vpop.permute.xlu0 %777 }
 0x186   : > { %2687 = vtanh.f32 %v1541_v56  ;;  %v1544_v25 = vadd.f32 %v2577_v4, %v4059_v45  ;;  %v794_v40 = vpop.permute.xlu1 %793  ;;  %v4065_v17 = vpop.f32.mrb[3].mxu0  ;;  %v1263_v20 = vsel %vm1245_vm10, %v1226_v54, %v778_v0  ;;  %v1533_v0 = vadd.f32 %v4059_v45, %v4062_v19 }
 0x187   : > { %v1279_v61 = vsel %vm1245_vm10, %v1242_v2, %v794_v40 }
 0x188   : > { %2689 = vtanh.f32 %v1544_v25 }
 0x189   : > { %v780_v21 = vpop.permute.xlu0 %779  ;;  %2691 = vtanh.f32 %v1533_v0 }
 0x18a   : > { %v796_v18 = vpop.permute.xlu1 %795  ;;  %v1265_v44 = vsel %vm1245_vm10, %v1228_v55, %v780_v21 }
 0x18b   : > { %v1281_v38 = vsel %vm1245_vm10, %v1244_v39, %v796_v18  ;;  %v1536_v18 = vadd.f32 %v4059_v45, %v4065_v17 }
 0x18d   : > { %v855_v57 = vpop.permute.xlu0 %854 }
 0x18e   : > { %v871_v29 = vpop.permute.xlu1 %870  ;;  %v1300_v52 = vsel %vm1282_vm11, %v1263_v20, %v855_v57 }
 0x18f   : > { %v1316_v43 = vsel %vm1282_vm11, %v1279_v61, %v871_v29 }
 0x190   : > { %v4067_v49 = vpop.eup %2687 }
 0x191   : > { %v857_v35 = vpop.permute.xlu0 %856  ;;  %v1713_v22 = vadd.f32 1.0, %v4067_v49 }
 0x192   : > { %v4070_v27 = vpop.eup %2689  ;;  %v873_v3 = vpop.permute.xlu1 %872  ;;  %v1302_v36 = vsel %vm1282_vm11, %v1265_v44, %v857_v35 }
 0x193   : > { %v4072_v58 = vmul.f32 0.5, %v1713_v22  ;;  %v1714_v48 = vadd.f32 1.0, %v4070_v27  ;;  %v1318_v12 = vsel %vm1282_vm11, %v1281_v38, %v873_v3 }
 0x195   : > { %1823 = vrot.lane.b32.xlu0 %v4072_v58, %s2876_s9  ;;  %v908_v23 = vpop.permute.xlu0 %907  ;;  %v4077_v59 = vmul.f32 0.5, %v1714_v48 }
 0x196   : > { %v924_v11 = vpop.permute.xlu1 %923  ;;  %v1337_v30 = vsel %vm1319_vm12, %v1300_v52, %v908_v23 }
 0x197   : > { %1825 = vrot.lane.b32.xlu1 %v4077_v59, %s2876_s9  ;;  %v1353_v14 = vsel %vm1319_vm12, %v1316_v43, %v924_v11 }
 0x199   : > { %v910_v15 = vpop.permute.xlu0 %909 }
 0x19a   : > { %v926_v5 = vpop.permute.xlu1 %925  ;;  %v1339_v33 = vsel %vm1319_vm12, %v1302_v36, %v910_v15 }
 0x19b   : > { %v1355_v7 = vsel %vm1319_vm12, %v1318_v12, %v926_v5  ;;  %v4131_v5 = vpop.eup %2691 }
 0x19c   : > { %v1711_v13 = vadd.f32 1.0, %v4131_v5 }
 0x19d   : > { %v1038_v62 = vpop.permute.xlu0 %1037 }
 0x19e   : > { %v1054_v47 = vpop.permute.xlu1 %1053  ;;  %v1374_v9 = vsel %vm1356_vm13, %v1337_v30, %v1038_v62 }
 0x19f   : > { %v1390_v60 = vsel %vm1356_vm13, %v1353_v14, %v1054_v47 }
 0x1a1   : > { %v1040_v51 = vpop.permute.xlu0 %1039 }
 0x1a2   : > { %v1056_v34 = vpop.permute.xlu1 %1055  ;;  %v1376_v46 = vsel %vm1356_vm13, %v1339_v33, %v1040_v51  ;;  %v4152_v51 = vmul.f32 0.5, %v1711_v13 }
 0x1a3   : > { %v1392_v42 = vsel %vm1356_vm13, %v1355_v7, %v1056_v34 }
 0x1a5   : > { %v1115_v6 = vpop.permute.xlu0 %1114 }
 0x1a6   : > { %v1131_v8 = vpop.permute.xlu1 %1130  ;;  %v1411_v32 = vsel %vm1393_vm14, %v1374_v9, %v1115_v6 }
 0x1a7   : > { %v1427_v31 = vsel %vm1393_vm14, %v1390_v60, %v1131_v8  ;;  %2590 = vmatprep.mubr.msk.bf16.mxu0 %vm1457_vm15, %v1411_v32 }
 0x1a8   : > { %2606 = vmatprep.mubr.msk.bf16.mxu1 %vm1457_vm15, %v1427_v31 }
 0x1a9   : > { %v1117_v24 = vpop.permute.xlu0 %1116 }
 0x1aa   : > { %v1133_v26 = vpop.permute.xlu1 %1132  ;;  %v1413_v56 = vsel %vm1393_vm14, %v1376_v46, %v1117_v24 }
 0x1ab   : > { %v1429_v4 = vsel %vm1393_vm14, %v1392_v42, %v1133_v26  ;;  %2591 = vmatmul.mubr.msk.bf16.gmra.mrb[16].mxu0 %vm1457_vm15, %v1413_v56 }
 0x1ac   : > { %2607 = vmatmul.mubr.msk.bf16.gmra.mrb[12].mxu1 %vm1457_vm15, %v1429_v4 }
 0x1c2   : > { %v2580_v25 = vpop.f32.mrb[4].mxu0 }
 0x1c3   : > { %v2596_v40 = vpop.f32.mrb[0].mxu1  ;;  %v1548_v21 = vpop.f32.mrb[5].mxu0  ;;  %v1557_v19 = vadd.f32 %v2580_v25, %v4059_v45 }
 0x1c4   : > { %v1621_v57 = vadd.f32 %v2596_v40, %v4059_v45  ;;  %v1612_v29 = vpop.f32.mrb[1].mxu1  ;;  %v2581_v35 = vpop.f32.mrb[6].mxu0  ;;  %v1549_v9 = vadd.f32 %v4059_v45, %v1548_v21 }
 0x1c5   : > { %v1613_v22 = vadd.f32 %v4059_v45, %v1612_v29  ;;  %v2597_v3 = vpop.f32.mrb[2].mxu1  ;;  %v1551_v48 = vpop.f32.mrb[7].mxu0  ;;  %v1560_v15 = vadd.f32 %v2581_v35, %v4059_v45 }
 0x1c6   : > { %2693 = vtanh.f32 %v1621_v57  ;;  %v1624_v23 = vadd.f32 %v2597_v3, %v4059_v45  ;;  %v1615_v11 = vpop.f32.mrb[3].mxu1  ;;  %v1552_v60 = vadd.f32 %v4059_v45, %v1551_v48 }
 0x1c7   : > { %2695 = vtanh.f32 %v1536_v18  ;;  %v1616_v17 = vadd.f32 %v4059_v45, %v1615_v11 }
 0x1c8   : > { %2697 = vtanh.f32 %v1613_v22 }
 0x1c9   : > { %2699 = vtanh.f32 %v1624_v23 }
 0x1ca   : > { %2701 = vtanh.f32 %v1557_v19 }
 0x1cb   : > { %2703 = vtanh.f32 %v1616_v17 }
 0x1cc   : > { %2705 = vtanh.f32 %v1560_v15 }
 0x1cd   : > { %2707 = vtanh.f32 %v1549_v9 }
 0x1d0   : > { %v4133_v50 = vpop.eup %2693 }
 0x1d1   : > { %v1733_v16 = vadd.f32 1.0, %v4133_v50  ;;  %v4136_v62 = vpop.eup %2695 }
 0x1d2   : > { %v4138_v47 = vpop.eup %2697  ;;  %v1712_v2 = vadd.f32 1.0, %v4136_v62 }
 0x1d3   : > { %v4140_v10 = vmul.f32 0.5, %v1733_v16  ;;  %v4143_v1 = vpop.eup %2699  ;;  %v1731_v20 = vadd.f32 1.0, %v4138_v47 }
 0x1d4   : > { %v1734_v41 = vadd.f32 1.0, %v4143_v1  ;;  %v4148_v28 = vpop.eup %2701  ;;  %v4162_v61 = vmul.f32 0.5, %v1712_v2 }
 0x1d5   : > { %1863 = vrot.lane.b32.xlu0 %v4140_v10, %s2876_s9  ;;  %v4156_v34 = vpop.eup %2703  ;;  %v4164_v52 = vmul.f32 0.5, %v1731_v20  ;;  %v1717_v53 = vadd.f32 1.0, %v4148_v28 }
 0x1d6   : > { %v4150_v54 = vmul.f32 0.5, %v1734_v41  ;;  %v1732_v63 = vadd.f32 1.0, %v4156_v34  ;;  %v4168_v43 = vpop.eup %2705 }
 0x1d7   : > { %v4176_v37 = vmul.f32 0.5, %v1717_v53  ;;  %v1718_v55 = vadd.f32 1.0, %v4168_v43  ;;  %v4195_v26 = vpop.eup %2707 }
 0x1d8   : > { %1865 = vrot.lane.b32.xlu1 %v4150_v54, %s2876_s9  ;;  %v4174_v30 = vmul.f32 0.5, %v1732_v63  ;;  %v1715_v21 = vadd.f32 1.0, %v4195_v26 }
 0x1d9   : > { %1819 = vrot.lane.b32.xlu0 %v4152_v51, %s2876_s9  ;;  %v4183_v14 = vmul.f32 0.5, %v1718_v55 }
 0x1da   : > { %v4216_v22 = vmul.f32 0.5, %v1715_v21 }
 0x1dc   : > { %1821 = vrot.lane.b32.xlu1 %v4162_v61, %s2876_s9  ;;  %4900 = vst [vmem:[#allocation9_spill] sm:$0xff] %v4216_v22 }
 0x1dd   : > { %1859 = vrot.lane.b32.xlu0 %v4164_v52, %s2876_s9 }
 0x1e0   : > { %1861 = vrot.lane.b32.xlu1 %v4174_v30, %s2876_s9 }
 0x1e1   : > { %1831 = vrot.lane.b32.xlu0 %v4176_v37, %s2876_s9 }
 0x1e4   : > { %1833 = vrot.lane.b32.xlu1 %v4183_v14, %s2876_s9 }
 0x202   : > { %v2584_v6 = vpop.f32.mrb[8].mxu0 }
 0x203   : > { %v2600_v39 = vpop.f32.mrb[4].mxu1  ;;  %v1564_v44 = vpop.f32.mrb[9].mxu0  ;;  %v1573_v46 = vadd.f32 %v2584_v6, %v4059_v45 }
 0x204   : > { %v1637_v8 = vadd.f32 %v2600_v39, %v4059_v45  ;;  %v1628_v32 = vpop.f32.mrb[5].mxu1  ;;  %v2585_v38 = vpop.f32.mrb[10].mxu0  ;;  %v1565_v63 = vadd.f32 %v4059_v45, %v1564_v44 }
 0x205   : > { %v1629_v36 = vadd.f32 %v4059_v45, %v1628_v32  ;;  %v2601_v31 = vpop.f32.mrb[6].mxu1  ;;  %v1567_v12 = vpop.f32.mrb[11].mxu0  ;;  %v1576_v42 = vadd.f32 %v2585_v38, %v4059_v45 }
 0x206   : > { %2709 = vtanh.f32 %v1637_v8  ;;  %v1640_v33 = vadd.f32 %v2601_v31, %v4059_v45  ;;  %v1631_v7 = vpop.f32.mrb[7].mxu1  ;;  %v1568_v6 = vadd.f32 %v4059_v45, %v1567_v12 }
 0x207   : > { %2711 = vtanh.f32 %v1552_v60  ;;  %v1632_v24 = vadd.f32 %v4059_v45, %v1631_v7 }
 0x208   : > { %2713 = vtanh.f32 %v1629_v36 }
 0x209   : > { %2715 = vtanh.f32 %v1640_v33 }
 0x20a   : > { %2717 = vtanh.f32 %v1573_v46 }
 0x20b   : > { %2719 = vtanh.f32 %v1632_v24 }
 0x20c   : > { %2721 = vtanh.f32 %v1576_v42 }
 0x20d   : > { %2723 = vtanh.f32 %v1565_v63 }
 0x210   : > { %v4197_v56 = vpop.eup %2709 }
 0x211   : > { %v1737_v4 = vadd.f32 1.0, %v4197_v56  ;;  %v4200_v0 = vpop.eup %2711 }
 0x212   : > { %v4202_v25 = vpop.eup %2713  ;;  %v1716_v3 = vadd.f32 1.0, %v4200_v0 }
 0x213   : > { %v4204_v40 = vmul.f32 0.5, %v1737_v4  ;;  %v4207_v18 = vpop.eup %2715  ;;  %v1735_v48 = vadd.f32 1.0, %v4202_v25 }
 0x214   : > { %v1738_v57 = vadd.f32 1.0, %v4207_v18  ;;  %v4212_v29 = vpop.eup %2717  ;;  %v4226_v11 = vmul.f32 0.5, %v1716_v3 }
 0x215   : > { %1871 = vrot.lane.b32.xlu0 %v4204_v40, %s2876_s9  ;;  %v4220_v23 = vpop.eup %2719  ;;  %v4228_v19 = vmul.f32 0.5, %v1735_v48  ;;  %v1721_v15 = vadd.f32 1.0, %v4212_v29 }
 0x216   : > { %v4214_v35 = vmul.f32 0.5, %v1738_v57  ;;  %4901 = vst [vmem:[#allocation10_spill] sm:$0xff] %v4226_v11  ;;  %v1736_v17 = vadd.f32 1.0, %v4220_v23  ;;  %v4232_v16 = vpop.eup %2721 }
 0x217   : > { %4902 = vst [vmem:[#allocation6_spill] sm:$0xff] %v4228_v19  ;;  %v4240_v41 = vmul.f32 0.5, %v1721_v15  ;;  %v1722_v2 = vadd.f32 1.0, %v4232_v16  ;;  %v4259_v46 = vpop.eup %2723 }
 0x218   : > { %4899 = vst [vmem:[#allocation5_spill] sm:$0xff] %v4214_v35  ;;  %1873 = vrot.lane.b32.xlu1 %v4214_v35, %s2876_s9  ;;  %v4238_v13 = vmul.f32 0.5, %v1736_v17  ;;  %v1719_v3 = vadd.f32 1.0, %v4259_v46 }
 0x219   : > { %1827 = vrot.lane.b32.xlu0 %v4216_v22, %s2876_s9  ;;  %4904 = vst [vmem:[#allocation2_spill] sm:$0xff] %v4240_v41  ;;  %v4247_v20 = vmul.f32 0.5, %v1722_v2 }
 0x21a   : > { %4903 = vst [vmem:[#allocation4_spill] sm:$0xff] %v4238_v13  ;;  %v4280_v63 = vmul.f32 0.5, %v1719_v3 }
 0x21b   : > { %4905 = vst [vmem:[#allocation7_spill] sm:$0xff] %v4247_v20 }
 0x21c   : > { %1829 = vrot.lane.b32.xlu1 %v4226_v11, %s2876_s9  ;;  %4908 = vst [vmem:[#allocation11_spill] sm:$0xff] %v4280_v63 }
 0x21d   : > { %1867 = vrot.lane.b32.xlu0 %v4228_v19, %s2876_s9 }
 0x220   : > { %1869 = vrot.lane.b32.xlu1 %v4238_v13, %s2876_s9 }
 0x221   : > { %1839 = vrot.lane.b32.xlu0 %v4240_v41, %s2876_s9 }
 0x224   : > { %1841 = vrot.lane.b32.xlu1 %v4247_v20, %s2876_s9 }
 0x242   : > { %v2588_v53 = vpop.f32.mrb[12].mxu0 }
 0x243   : > { %v2604_v55 = vpop.f32.mrb[8].mxu1  ;;  %v1580_v9 = vpop.f32.mrb[13].mxu0  ;;  %v1589_v44 = vadd.f32 %v2588_v53, %v4059_v45 }
 0x244   : > { %v1653_v39 = vadd.f32 %v2604_v55, %v4059_v45  ;;  %v1644_v60 = vpop.f32.mrb[9].mxu1  ;;  %v2589_v8 = vpop.f32.mrb[14].mxu0 }
 0x245   : > { %v1645_v32 = vadd.f32 %v4059_v45, %v1644_v60  ;;  %v2605_v38 = vpop.f32.mrb[10].mxu1  ;;  %v1583_v36 = vpop.f32.mrb[15].mxu0  ;;  %v1592_v7 = vadd.f32 %v2589_v8, %v4059_v45 }
 0x246   : > { %2725 = vtanh.f32 %v1653_v39  ;;  %v1656_v31 = vadd.f32 %v2605_v38, %v4059_v45  ;;  %v1647_v33 = vpop.f32.mrb[11].mxu1 }
 0x247   : > { %2727 = vtanh.f32 %v1568_v6  ;;  %v1648_v12 = vadd.f32 %v4059_v45, %v1647_v33 }
 0x248   : > { %2729 = vtanh.f32 %v1645_v32 }
 0x249   : > { %2731 = vtanh.f32 %v1656_v31 }
 0x24a   : > { %2733 = vtanh.f32 %v1589_v44 }
 0x24b   : > { %2735 = vtanh.f32 %v1648_v12 }
 0x24c   : > { %2737 = vtanh.f32 %v1592_v7  ;;  %v1581_v7 = vadd.f32 %v4059_v45, %v1580_v9 }
 0x24e   : > { %2739 = vtanh.f32 %v1581_v7 }
 0x250   : > { %v4261_v24 = vpop.eup %2725 }
 0x251   : > { %v1741_v42 = vadd.f32 1.0, %v4261_v24  ;;  %v4264_v4 = vpop.eup %2727 }
 0x252   : > { %v4266_v21 = vpop.eup %2729  ;;  %v1720_v53 = vadd.f32 1.0, %v4264_v4 }
 0x253   : > { %v4268_v57 = vmul.f32 0.5, %v1741_v42  ;;  %v4271_v48 = vpop.eup %2731  ;;  %v1739_v55 = vadd.f32 1.0, %v4266_v21 }
 0x254   : > { %v1742_v17 = vadd.f32 1.0, %v4271_v48  ;;  %v4276_v15 = vpop.eup %2733  ;;  %v4290_v39 = vmul.f32 0.5, %v1720_v53  ;;  %v1584_v53 = vadd.f32 %v4059_v45, %v1583_v36 }
 0x255   : > { %4906 = vst [vmem:[#allocation8_spill] sm:$0xff] %v4268_v57  ;;  %1879 = vrot.lane.b32.xlu0 %v4268_v57, %s2876_s9  ;;  %v4284_v6 = vpop.eup %2735  ;;  %v4292_v60 = vmul.f32 0.5, %v1739_v55  ;;  %v1725_v32 = vadd.f32 1.0, %v4276_v15 }
 0x256   : > { %v4278_v2 = vmul.f32 0.5, %v1742_v17  ;;  %4909 = vst [vmem:[#allocation12_spill] sm:$0xff] %v4290_v39  ;;  %v1740_v8 = vadd.f32 1.0, %v4284_v6  ;;  %v4296_v38 = vpop.eup %2737 }
 0x257   : > { %4910 = vst [vmem:[#allocation13_spill] sm:$0xff] %v4292_v60  ;;  %v4304_v33 = vmul.f32 0.5, %v1725_v32  ;;  %v1726_v44 = vadd.f32 1.0, %v4296_v38 }
 0x258   : > { %4907 = vst [vmem:[#allocation3_spill] sm:$0xff] %v4278_v2  ;;  %1881 = vrot.lane.b32.xlu1 %v4278_v2, %s2876_s9  ;;  %v4302_v31 = vmul.f32 0.5, %v1740_v8 }
 0x259   : > { %1835 = vrot.lane.b32.xlu0 %v4280_v63, %s2876_s9  ;;  %4912 = vst [vmem:[#allocation15_spill] sm:$0xff] %v4304_v33  ;;  %v4311_v12 = vmul.f32 0.5, %v1726_v44 }
 0x25a   : > { %4911 = vst [vmem:[#allocation14_spill] sm:$0xff] %v4302_v31 }
 0x25b   : > { %4913 = vst [vmem:[#allocation16_spill] sm:$0xff] %v4311_v12 }
 0x25c   : > { %1837 = vrot.lane.b32.xlu1 %v4290_v39, %s2876_s9  ;;  %v1824_v39 = vpop.permute.xlu0 %1823 }
 0x25d   : > { %1875 = vrot.lane.b32.xlu0 %v4292_v60, %s2876_s9 }
 0x260   : > { %1877 = vrot.lane.b32.xlu1 %v4302_v31, %s2876_s9  ;;  %v1864_v63 = vpop.permute.xlu0 %1863 }
 0x261   : > { %1847 = vrot.lane.b32.xlu0 %v4304_v33, %s2876_s9 }
 0x264   : > { %1849 = vrot.lane.b32.xlu1 %v4311_v12, %s2876_s9 }
 0x27e   : > { %v2592_v42 = vpop.f32.mrb[16].mxu0 }
 0x27f   : > { %v2608_v3 = vpop.f32.mrb[12].mxu1  ;;  %v1596_v17 = vpop.f32.mrb[17].mxu0  ;;  %v1605_v9 = vadd.f32 %v2592_v42, %v4059_v45 }
 0x280   : > { %v1669_v55 = vadd.f32 %v2608_v3, %v4059_v45  ;;  %v1660_v8 = vpop.f32.mrb[13].mxu1  ;;  %v2593_v32 = vpop.f32.mrb[18].mxu0  ;;  %v1597_v3 = vadd.f32 %v4059_v45, %v1596_v17 }
 0x281   : > { %v1661_v31 = vadd.f32 %v4059_v45, %v1660_v8  ;;  %v2609_v33 = vpop.f32.mrb[14].mxu1  ;;  %v1599_v44 = vpop.f32.mrb[19].mxu0  ;;  %v1608_v7 = vadd.f32 %v2593_v32, %v4059_v45 }
 0x282   : > { %2741 = vtanh.f32 %v1669_v55  ;;  %v1672_v60 = vadd.f32 %v2609_v33, %v4059_v45  ;;  %v1663_v12 = vpop.f32.mrb[15].mxu1  ;;  %v4324_v8 = vpop.eup %2739 }
 0x283   : > { %2743 = vtanh.f32 %v1584_v53  ;;  %v1664_v36 = vadd.f32 %v4059_v45, %v1663_v12  ;;  %v1826_v55 = vpop.permute.xlu1 %1825  ;;  %v1723_v32 = vadd.f32 1.0, %v4324_v8 }
 0x284   : > { %2745 = vtanh.f32 %v1661_v31 }
 0x285   : > { %2747 = vtanh.f32 %v1672_v60  ;;  %v1600_v60 = vadd.f32 %v4059_v45, %v1599_v44  ;;  %v4346_v45 = vmul.f32 0.5, %v1723_v32 }
 0x286   : > { %2749 = vtanh.f32 %v1605_v9 }
 0x287   : > { %2751 = vtanh.f32 %v1664_v36  ;;  %v1866_v17 = vpop.permute.xlu1 %1865  ;;  %v1820_v36 = vpop.permute.xlu0 %1819  ;;  %4916 = vst [vmem:[#allocation19_spill] sm:$0xff] %v4346_v45 }
 0x288   : > { %2753 = vtanh.f32 %v1597_v3 }
 0x289   : > { %2755 = vtanh.f32 %v1608_v7 }
 0x28a   : > { %2757 = vtanh.f32 %v1600_v60  ;;  %v1929_v60 = vmul.f32 %v4067_v49, %v1824_v39  ;;  %v1949_v49 = vmul.f32 %v4133_v50, %v1864_v63  ;;  %v1927_v50 = vmul.f32 %v4131_v5, %v1820_v36 }
 0x28b   : > { %v1822_v20 = vpop.permute.xlu1 %1821 }
 0x28c   : > { %v4326_v33 = vpop.eup %2741  ;;  %2759 = vtanh.f32 %v1929_v60 }
 0x28d   : > { %v1745_v42 = vadd.f32 1.0, %v4326_v33  ;;  %v4329_v31 = vpop.eup %2743 }
 0x28e   : > { %v4332_v12 = vpop.eup %2745  ;;  %v1724_v44 = vadd.f32 1.0, %v4329_v31 }
 0x28f   : > { %v4334_v53 = vmul.f32 0.5, %v1745_v42  ;;  %v4337_v9 = vpop.eup %2747  ;;  %v1743_v42 = vadd.f32 1.0, %v4332_v12  ;;  %v1862_v39 = vpop.permute.xlu1 %1861 }
 0x290   : > { %v1746_v3 = vadd.f32 1.0, %v4337_v9  ;;  %v4342_v2 = vpop.eup %2749  ;;  %v4359_v32 = vmul.f32 0.5, %v1724_v44 }
 0x291   : > { %4914 = vst [vmem:[#allocation17_spill] sm:$0xff] %v4334_v53  ;;  %1887 = vrot.lane.b32.xlu0 %v4334_v53, %s2876_s9  ;;  %v4350_v57 = vpop.eup %2751  ;;  %v4361_v41 = vmul.f32 0.5, %v1743_v42  ;;  %v1729_v19 = vadd.f32 1.0, %v4342_v2 }
 0x292   : > { %v4344_v7 = vmul.f32 0.5, %v1746_v3  ;;  %v4357_v53 = vpop.eup %2753  ;;  %v1860_v3 = vpop.permute.xlu0 %1859  ;;  %v1744_v13 = vadd.f32 1.0, %v4350_v57 }
 0x293   : > { %v4365_v11 = vpop.eup %2755  ;;  %v4375_v42 = vmul.f32 0.5, %v1729_v19  ;;  %v1727_v22 = vadd.f32 1.0, %v4357_v53  ;;  %v1947_v5 = vmul.f32 %v4138_v47, %v1860_v3 }
 0x294   : > { %4915 = vst [vmem:[#allocation18_spill] sm:$0xff] %v4344_v7  ;;  %1889 = vrot.lane.b32.xlu1 %v4344_v7, %s2876_s9  ;;  %v1930_v7 = vmul.f32 %v4070_v27, %v1826_v55  ;;  %v4373_v44 = vmul.f32 0.5, %v1744_v13  ;;  %v4379_v35 = vpop.eup %2757  ;;  %v1950_v27 = vmul.f32 %v4143_v1, %v1866_v17  ;;  %v1834_v1 = vpop.permute.xlu1 %1833 }
 0x295   : > { %1843 = vrot.lane.b32.xlu0 %v4346_v45, %s2876_s9  ;;  %v1730_v45 = vadd.f32 1.0, %v4365_v11  ;;  %v4389_v13 = vmul.f32 0.5, %v1727_v22  ;;  %v1728_v63 = vadd.f32 1.0, %v4379_v35 }
 0x296   : > { %2761 = vtanh.f32 %v1930_v7  ;;  %v1832_v55 = vpop.permute.xlu0 %1831  ;;  %v1928_v7 = vmul.f32 %v4136_v62, %v1822_v20  ;;  %v4400_v22 = vpop.eup %2759 }
 0x297   : > { %2763 = vtanh.f32 %v1949_v49  ;;  %v4387_v19 = vmul.f32 0.5, %v1730_v45  ;;  %v4398_v36 = vmul.f32 0.5, %v1728_v63  ;;  %v1948_v45 = vmul.f32 %v4156_v34, %v1862_v39 }
 0x298   : > { %1845 = vrot.lane.b32.xlu1 %v4359_v32, %s2876_s9  ;;  %2765 = vtanh.f32 %v1950_v27  ;;  %v1874_v60 = vpop.permute.xlu1 %1873  ;;  %v1933_v62 = vmul.f32 %v4148_v28, %v1832_v55  ;;  %v1934_v49 = vmul.f32 %v4168_v43, %v1834_v1 }
 0x299   : > { %1883 = vrot.lane.b32.xlu0 %v4361_v41, %s2876_s9  ;;  %2767 = vtanh.f32 %v1927_v50  ;;  %v1954_v55 = vmul.f32 %v4207_v18, %v1874_v60 }
 0x29a   : > { %v1872_v17 = vpop.permute.xlu0 %1871  ;;  %2769 = vtanh.f32 %v1928_v7 }
 0x29b   : > { %2771 = vtanh.f32 %v1947_v5  ;;  %v1953_v34 = vmul.f32 %v4197_v56, %v1872_v17 }
 0x29c   : > { %1885 = vrot.lane.b32.xlu1 %v4373_v44, %s2876_s9  ;;  %2773 = vtanh.f32 %v1948_v45  ;;  %v1830_v28 = vpop.permute.xlu1 %1829 }
 0x29d   : > { %1855 = vrot.lane.b32.xlu0 %v4375_v42, %s2876_s9  ;;  %2775 = vtanh.f32 %v1933_v62  ;;  %v1932_v7 = vmul.f32 %v4200_v0, %v1830_v28 }
 0x29e   : > { %v1828_v47 = vpop.permute.xlu0 %1827  ;;  %2777 = vtanh.f32 %v1934_v49 }
 0x29f   : > { %2779 = vtanh.f32 %v1953_v34  ;;  %v1931_v43 = vmul.f32 %v4195_v26, %v1828_v47 }
 0x2a0   : > { %1857 = vrot.lane.b32.xlu1 %v4387_v19, %s2876_s9  ;;  %v4408_v20 = vpop.eup %2761  ;;  %2781 = vtanh.f32 %v1954_v55  ;;  %v1870_v1 = vpop.permute.xlu1 %1869 }
 0x2a1   : > { %1851 = vrot.lane.b32.xlu0 %v4389_v13, %s2876_s9  ;;  %v4410_v3 = vpop.eup %2763  ;;  %2783 = vtanh.f32 %v1931_v43  ;;  %v1952_v45 = vmul.f32 %v4220_v23, %v1870_v1 }
 0x2a2   : > { %v4418_v39 = vpop.eup %2765  ;;  %v1868_v50 = vpop.permute.xlu0 %1867  ;;  %2785 = vtanh.f32 %v1932_v7 }
 0x2a3   : > { %v4420_v27 = vpop.eup %2767  ;;  %v1951_v18 = vmul.f32 %v4202_v25, %v1868_v50 }
 0x2a4   : > { %1853 = vrot.lane.b32.xlu1 %v4398_v36, %s2876_s9  ;;  %v4428_v63 = vpop.eup %2769  ;;  %v1842_v25 = vpop.permute.xlu1 %1841 }
 0x2a5   : > { %2039 = vrot.lane.b32.xlu0 %v4400_v22, %s2877_s10  ;;  %v4430_v56 = vpop.eup %2771  ;;  %2787 = vtanh.f32 %v1951_v18  ;;  %v1938_v23 = vmul.f32 %v4232_v16, %v1842_v25 }
 0x2a6   : > { %v4438_v17 = vpop.eup %2773  ;;  %v1840_v26 = vpop.permute.xlu0 %1839  ;;  %2789 = vtanh.f32 %v1952_v45 }
 0x2a7   : > { %v4440_v5 = vpop.eup %2775  ;;  %v1937_v0 = vmul.f32 %v4212_v29, %v1840_v26 }
 0x2a8   : > { %2041 = vrot.lane.b32.xlu1 %v4408_v20, %s2877_s10  ;;  %v4448_v60 = vpop.eup %2777 }
 0x2a9   : > { %2079 = vrot.lane.b32.xlu0 %v4410_v3, %s2877_s10  ;;  %v4450_v62 = vpop.eup %2779  ;;  %2791 = vtanh.f32 %v1937_v0 }
 0x2aa   : > { %v4457_v47 = vpop.eup %2781  ;;  %2793 = vtanh.f32 %v1938_v23 }
 0x2ab   : > { %v4459_v49 = vpop.eup %2783 }
 0x2ac   : > { %2081 = vrot.lane.b32.xlu1 %v4418_v39, %s2877_s10  ;;  %v4465_v29 = vpop.eup %2785 }
 0x2ad   : > { %2035 = vrot.lane.b32.xlu0 %v4420_v27, %s2877_s10 }
 0x2af   : > { %v4467_v34 = vpop.eup %2787 }
 0x2b0   : > { %2037 = vrot.lane.b32.xlu1 %v4428_v63, %s2877_s10  ;;  %v4473_v16 = vpop.eup %2789 }
 0x2b1   : > { %2075 = vrot.lane.b32.xlu0 %v4430_v56, %s2877_s10 }
 0x2b3   : > { %v4475_v28 = vpop.eup %2791 }
 0x2b4   : > { %2077 = vrot.lane.b32.xlu1 %v4438_v17, %s2877_s10  ;;  %v4481_v50 = vpop.eup %2793 }
 0x2b5   : > { %2047 = vrot.lane.b32.xlu0 %v4440_v5, %s2877_s10  ;;  %4917 = vst [vmem:[#allocation20_spill] sm:$0xff] %v4481_v50 }
 0x2b8   : > { %2049 = vrot.lane.b32.xlu1 %v4448_v60, %s2877_s10 }
 0x2b9   : > { %2087 = vrot.lane.b32.xlu0 %v4450_v62, %s2877_s10 }
 0x2bc   : > { %2089 = vrot.lane.b32.xlu1 %v4457_v47, %s2877_s10 }
 0x2bd   : > { %2043 = vrot.lane.b32.xlu0 %v4459_v49, %s2877_s10 }
 0x2c0   : > { %2045 = vrot.lane.b32.xlu1 %v4465_v29, %s2877_s10 }
 0x2c1   : > { %2083 = vrot.lane.b32.xlu0 %v4467_v34, %s2877_s10 }
 0x2c4   : > { %2085 = vrot.lane.b32.xlu1 %v4473_v16, %s2877_s10 }
 0x2c5   : > { %2055 = vrot.lane.b32.xlu0 %v4475_v28, %s2877_s10 }
 0x2c7   : > { %v1880_v55 = vpop.permute.xlu0 %1879 }
 0x2c8   : > { %v1957_v43 = vmul.f32 %v4261_v24, %v1880_v55  ;;  %2057 = vrot.lane.b32.xlu1 %v4481_v50, %s2877_s10 }
 0x2ca   : > { %2795 = vtanh.f32 %v1957_v43  ;;  %v1882_v7 = vpop.permute.xlu1 %1881 }
 0x2cb   : > { %v1836_v1 = vpop.permute.xlu0 %1835  ;;  %v1958_v18 = vmul.f32 %v4271_v48, %v1882_v7 }
 0x2cc   : > { %v1935_v26 = vmul.f32 %v4259_v46, %v1836_v1 }
 0x2cd   : > { %2797 = vtanh.f32 %v1958_v18 }
 0x2ce   : > { %2799 = vtanh.f32 %v1935_v26  ;;  %v1838_v45 = vpop.permute.xlu1 %1837 }
 0x2cf   : > { %v1876_v0 = vpop.permute.xlu0 %1875  ;;  %v1936_v25 = vmul.f32 %v4264_v4, %v1838_v45 }
 0x2d0   : > { %v1955_v23 = vmul.f32 %v4266_v21, %v1876_v0 }
 0x2d1   : > { %2801 = vtanh.f32 %v1936_v25 }
 0x2d2   : > { %2803 = vtanh.f32 %v1955_v23  ;;  %v1878_v24 = vpop.permute.xlu1 %1877 }
 0x2d3   : > { %v1848_v55 = vpop.permute.xlu0 %1847  ;;  %v1956_v43 = vmul.f32 %v4284_v6, %v1878_v24 }
 0x2d4   : > { %v4490_v50 = vpop.eup %2795  ;;  %v1941_v48 = vmul.f32 %v4276_v15, %v1848_v55 }
 0x2d5   : > { %2095 = vrot.lane.b32.xlu0 %v4490_v50, %s2877_s10  ;;  %2805 = vtanh.f32 %v1956_v43 }
 0x2d6   : > { %2807 = vtanh.f32 %v1941_v48  ;;  %v1850_v46 = vpop.permute.xlu1 %1849 }
 0x2d7   : > { %v4496_v7 = vpop.eup %2797  ;;  %v1942_v4 = vmul.f32 %v4296_v38, %v1850_v46 }
 0x2d8   : > { %v4499_v21 = vpop.eup %2799  ;;  %2097 = vrot.lane.b32.xlu1 %v4496_v7, %s2877_s10 }
 0x2d9   : > { %2809 = vtanh.f32 %v1942_v4  ;;  %2051 = vrot.lane.b32.xlu0 %v4499_v21, %s2877_s10 }
 0x2db   : > { %v4505_v15 = vpop.eup %2801 }
 0x2dc   : > { %v4507_v6 = vpop.eup %2803  ;;  %2053 = vrot.lane.b32.xlu1 %v4505_v15, %s2877_s10 }
 0x2dd   : > { %2091 = vrot.lane.b32.xlu0 %v4507_v6, %s2877_s10 }
 0x2df   : > { %v4513_v38 = vpop.eup %2805 }
 0x2e0   : > { %v4515_v1 = vpop.eup %2807  ;;  %2093 = vrot.lane.b32.xlu1 %v4513_v38, %s2877_s10 }
 0x2e1   : > { %2063 = vrot.lane.b32.xlu0 %v4515_v1, %s2877_s10 }
 0x2e3   : > { %v4521_v18 = vpop.eup %2809 }
 0x2e4   : > { %4918 = vst [vmem:[#allocation21_spill] sm:$0xff] %v4521_v18  ;;  %2065 = vrot.lane.b32.xlu1 %v4521_v18, %s2877_s10 }
 0x303   : > { %v1888_v26 = vpop.permute.xlu0 %1887 }
 0x304   : > { %v1961_v45 = vmul.f32 %v4326_v33, %v1888_v26 }
 0x306   : > { %2811 = vtanh.f32 %v1961_v45  ;;  %v1890_v0 = vpop.permute.xlu1 %1889 }
 0x307   : > { %v1844_v25 = vpop.permute.xlu0 %1843  ;;  %v1962_v23 = vmul.f32 %v4337_v9, %v1890_v0 }
 0x308   : > { %v1939_v24 = vmul.f32 %v4324_v8, %v1844_v25 }
 0x309   : > { %2813 = vtanh.f32 %v1962_v23 }
 0x30a   : > { %2815 = vtanh.f32 %v1939_v24  ;;  %v1846_v55 = vpop.permute.xlu1 %1845 }
 0x30b   : > { %v1884_v43 = vpop.permute.xlu0 %1883  ;;  %v1940_v48 = vmul.f32 %v4329_v31, %v1846_v55 }
 0x30c   : > { %v1959_v46 = vmul.f32 %v4332_v12, %v1884_v43 }
 0x30d   : > { %2817 = vtanh.f32 %v1940_v48 }
 0x30e   : > { %2819 = vtanh.f32 %v1959_v46  ;;  %v1886_v4 = vpop.permute.xlu1 %1885 }
 0x30f   : > { %v1856_v18 = vpop.permute.xlu0 %1855  ;;  %v1960_v26 = vmul.f32 %v4350_v57, %v1886_v4 }
 0x310   : > { %v4530_v33 = vpop.eup %2811  ;;  %v1945_v9 = vmul.f32 %v4342_v2, %v1856_v18 }
 0x311   : > { %4919 = vst [vmem:[#allocation22_spill] sm:$0xff] %v4530_v33  ;;  %2103 = vrot.lane.b32.xlu0 %v4530_v33, %s2877_s10  ;;  %2821 = vtanh.f32 %v1960_v26 }
 0x312   : > { %2823 = vtanh.f32 %v1945_v9  ;;  %v1858_v8 = vpop.permute.xlu1 %1857 }
 0x313   : > { %v1852_v45 = vpop.permute.xlu0 %1851  ;;  %v4536_v31 = vpop.eup %2813  ;;  %v1946_v12 = vmul.f32 %v4365_v11, %v1858_v8 }
 0x314   : > { %4920 = vst [vmem:[#allocation23_spill] sm:$0xff] %v4536_v31  ;;  %v1943_v0 = vmul.f32 %v4357_v53, %v1852_v45  ;;  %v4540_v25 = vpop.eup %2815  ;;  %2105 = vrot.lane.b32.xlu1 %v4536_v31, %s2877_s10 }
 0x315   : > { %2825 = vtanh.f32 %v1946_v12  ;;  %2059 = vrot.lane.b32.xlu0 %v4540_v25, %s2877_s10 }
 0x316   : > { %2827 = vtanh.f32 %v1943_v0  ;;  %v1854_v57 = vpop.permute.xlu1 %1853 }
 0x317   : > { %v2040_v2 = vpop.permute.xlu0 %2039  ;;  %v4546_v18 = vpop.eup %2817  ;;  %v1944_v23 = vmul.f32 %v4379_v35, %v1854_v57 }
 0x318   : > { %v4549_v24 = vpop.eup %2819  ;;  %2061 = vrot.lane.b32.xlu1 %v4546_v18, %s2877_s10  ;;  %v2145_v45 = vmul.f32 %v2040_v2, %v4072_v58 }
 0x319   : > { %2829 = vtanh.f32 %v1944_v23  ;;  %2099 = vrot.lane.b32.xlu0 %v4549_v24, %s2877_s10 }
 0x31a   : > { %v2042_v11 = vpop.permute.xlu1 %2041 }
 0x31b   : > { %v2080_v53 = vpop.permute.xlu0 %2079  ;;  %v4555_v55 = vpop.eup %2821  ;;  %v2146_v12 = vmul.f32 %v2042_v11, %v4077_v59 }
 0x31c   : > { %v4557_v43 = vpop.eup %2823  ;;  %2101 = vrot.lane.b32.xlu1 %v4555_v55, %s2877_s10  ;;  %v2165_v57 = vmul.f32 %v2080_v53, %v4140_v10 }
 0x31d   : > { %2071 = vrot.lane.b32.xlu0 %v4557_v43, %s2877_s10 }
 0x31e   : > { %v2082_v35 = vpop.permute.xlu1 %2081 }
 0x31f   : > { %v2036_v48 = vpop.permute.xlu0 %2035  ;;  %v4563_v46 = vpop.eup %2825  ;;  %v2166_v31 = vmul.f32 %v2082_v35, %v4150_v54 }
 0x320   : > { %v4565_v4 = vpop.eup %2827  ;;  %2073 = vrot.lane.b32.xlu1 %v4563_v46, %s2877_s10  ;;  %v2143_v33 = vmul.f32 %v2036_v48, %v4152_v51 }
 0x321   : > { %2067 = vrot.lane.b32.xlu0 %v4565_v4, %s2877_s10 }
 0x322   : > { %v2038_v26 = vpop.permute.xlu1 %2037 }
 0x323   : > { %v2076_v9 = vpop.permute.xlu0 %2075  ;;  %v4571_v8 = vpop.eup %2829  ;;  %v2144_v2 = vmul.f32 %v2038_v26, %v4162_v61 }
 0x324   : > { %2069 = vrot.lane.b32.xlu1 %v4571_v8, %s2877_s10  ;;  %v2163_v11 = vmul.f32 %v2076_v9, %v4164_v52  ;;  %v4921_v52 = vld [vmem:[#allocation5_spill] sm:$0xff]  ;;  %v4923_v9 = vld [vmem:[#allocation10_spill] sm:$0xff] }
 0x325   : > { %2219 = vrot.lane.b32.xlu0 %v2145_v45, %s2876_s9 }
 0x326   : > { %v2078_v0 = vpop.permute.xlu1 %2077 }
 0x327   : > { %v2048_v23 = vpop.permute.xlu0 %2047  ;;  %v2164_v53 = vmul.f32 %v2078_v0, %v4174_v30  ;;  %v4922_v30 = vld [vmem:[#allocation9_spill] sm:$0xff]  ;;  %v4925_v0 = vld [vmem:[#allocation4_spill] sm:$0xff] }
 0x328   : > { %2221 = vrot.lane.b32.xlu1 %v2146_v12, %s2876_s9  ;;  %v2149_v54 = vmul.f32 %v2048_v23, %v4176_v37  ;;  %v4926_v23 = vld [vmem:[#allocation2_spill] sm:$0xff] }
 0x329   : > { %2259 = vrot.lane.b32.xlu0 %v2165_v57, %s2876_s9 }
 0x32a   : > { %v2050_v58 = vpop.permute.xlu1 %2049 }
 0x32b   : > { %v2088_v59 = vpop.permute.xlu0 %2087 }
 0x32c   : > { %2261 = vrot.lane.b32.xlu1 %v2166_v31, %s2876_s9  ;;  %v2169_v61 = vmul.f32 %v2088_v59, %v4204_v40  ;;  %v4927_v59 = vld [vmem:[#allocation7_spill] sm:$0xff] }
 0x32d   : > { %2215 = vrot.lane.b32.xlu0 %v2143_v33, %s2876_s9  ;;  %v2150_v33 = vmul.f32 %v2050_v58, %v4183_v14  ;;  %v4924_v14 = vld [vmem:[#allocation6_spill] sm:$0xff] }
 0x32e   : > { %v2090_v10 = vpop.permute.xlu1 %2089 }
 0x32f   : > { %v2044_v51 = vpop.permute.xlu0 %2043  ;;  %v2170_v35 = vmul.f32 %v2090_v10, %v4921_v52  ;;  %v4930_v52 = vld [vmem:[#allocation11_spill] sm:$0xff] }
 0x330   : > { %2217 = vrot.lane.b32.xlu1 %v2144_v2, %s2876_s9  ;;  %v2147_v26 = vmul.f32 %v2044_v51, %v4922_v30  ;;  %v4931_v30 = vld [vmem:[#allocation12_spill] sm:$0xff] }
 0x331   : > { %2255 = vrot.lane.b32.xlu0 %v2163_v11, %s2876_s9 }
 0x332   : > { %v2046_v31 = vpop.permute.xlu1 %2045 }
 0x333   : > { %v2084_v48 = vpop.permute.xlu0 %2083  ;;  %v2148_v45 = vmul.f32 %v2046_v31, %v4923_v9  ;;  %v4932_v9 = vld [vmem:[#allocation13_spill] sm:$0xff] }
 0x334   : > { %2257 = vrot.lane.b32.xlu1 %v2164_v53, %s2876_s9  ;;  %v2167_v12 = vmul.f32 %v2084_v48, %v4924_v14  ;;  %v4928_v53 = vld [vmem:[#allocation8_spill] sm:$0xff] }
 0x335   : > { %2227 = vrot.lane.b32.xlu0 %v2149_v54, %s2876_s9 }
 0x336   : > { %v2086_v37 = vpop.permute.xlu1 %2085 }
 0x337   : > { %v2056_v40 = vpop.permute.xlu0 %2055  ;;  %v2168_v57 = vmul.f32 %v2086_v37, %v4925_v0 }
 0x338   : > { %2229 = vrot.lane.b32.xlu1 %v2150_v33, %s2876_s9  ;;  %v2153_v58 = vmul.f32 %v2056_v40, %v4926_v23  ;;  %v4929_v33 = vld [vmem:[#allocation3_spill] sm:$0xff] }
 0x339   : > { %2267 = vrot.lane.b32.xlu0 %v2169_v61, %s2876_s9 }
 0x33a   : > { %v2058_v2 = vpop.permute.xlu1 %2057 }
 0x33b   : > { %v2154_v11 = vmul.f32 %v2058_v2, %v4927_v59  ;;  %v4935_v2 = vld [vmem:[#allocation16_spill] sm:$0xff] }
 0x33c   : > { %2269 = vrot.lane.b32.xlu1 %v2170_v35, %s2876_s9 }
 0x33d   : > { %2223 = vrot.lane.b32.xlu0 %v2147_v26, %s2876_s9 }
 0x340   : > { %2225 = vrot.lane.b32.xlu1 %v2148_v45, %s2876_s9 }
 0x341   : > { %2263 = vrot.lane.b32.xlu0 %v2167_v12, %s2876_s9  ;;  %v4933_v12 = vld [vmem:[#allocation14_spill] sm:$0xff] }
 0x344   : > { %2265 = vrot.lane.b32.xlu1 %v2168_v57, %s2876_s9  ;;  %v4934_v57 = vld [vmem:[#allocation15_spill] sm:$0xff] }
 0x345   : > { %2235 = vrot.lane.b32.xlu0 %v2153_v58, %s2876_s9 }
 0x347   : > { %v2096_v10 = vpop.permute.xlu0 %2095 }
 0x348   : > { %v2173_v54 = vmul.f32 %v2096_v10, %v4928_v53  ;;  %2237 = vrot.lane.b32.xlu1 %v2154_v11, %s2876_s9 }
 0x34a   : > { %2275 = vrot.lane.b32.xlu0 %v2173_v54, %s2876_s9  ;;  %v2098_v51 = vpop.permute.xlu1 %2097  ;;  %v4936_v54 = vld [vmem:[#allocation19_spill] sm:$0xff] }
 0x34b   : > { %v2174_v61 = vmul.f32 %v2098_v51, %v4929_v33  ;;  %v2052_v31 = vpop.permute.xlu0 %2051 }
 0x34c   : > { %v2151_v35 = vmul.f32 %v2052_v31, %v4930_v52 }
 0x34d   : > { %2277 = vrot.lane.b32.xlu1 %v2174_v61, %s2876_s9 }
 0x34e   : > { %v2054_v48 = vpop.permute.xlu1 %2053  ;;  %2231 = vrot.lane.b32.xlu0 %v2151_v35, %s2876_s9 }
 0x34f   : > { %v2152_v26 = vmul.f32 %v2054_v48, %v4931_v30  ;;  %v2092_v37 = vpop.permute.xlu0 %2091 }
 0x350   : > { %v2171_v45 = vmul.f32 %v2092_v37, %v4932_v9 }
 0x351   : > { %2233 = vrot.lane.b32.xlu1 %v2152_v26, %s2876_s9 }
 0x352   : > { %v2094_v14 = vpop.permute.xlu1 %2093  ;;  %2271 = vrot.lane.b32.xlu0 %v2171_v45, %s2876_s9 }
 0x353   : > { %v2172_v40 = vmul.f32 %v2094_v14, %v4933_v12  ;;  %v2064_v0 = vpop.permute.xlu0 %2063 }
 0x354   : > { %v2157_v23 = vmul.f32 %v2064_v0, %v4934_v57 }
 0x355   : > { %2273 = vrot.lane.b32.xlu1 %v2172_v40, %s2876_s9  ;;  %v4938_v40 = vld [vmem:[#allocation18_spill] sm:$0xff] }
 0x356   : > { %v2066_v58 = vpop.permute.xlu1 %2065  ;;  %2243 = vrot.lane.b32.xlu0 %v2157_v23, %s2876_s9 }
 0x357   : > { %v2158_v59 = vmul.f32 %v2066_v58, %v4935_v2 }
 0x359   : > { %2245 = vrot.lane.b32.xlu1 %v2158_v59, %s2876_s9 }
 0x383   : > { %v2104_v11 = vpop.permute.xlu0 %2103 }
 0x386   : > { %v2106_v10 = vpop.permute.xlu1 %2105 }
 0x387   : > { %v2060_v53 = vpop.permute.xlu0 %2059  ;;  %v2178_v0 = vmul.f32 %v2106_v10, %v4938_v40 }
 0x388   : > { %v2155_v51 = vmul.f32 %v2060_v53, %v4936_v54 }
 0x38a   : > { %v2062_v33 = vpop.permute.xlu1 %2061  ;;  %2239 = vrot.lane.b32.xlu0 %v2155_v51, %s2876_s9 }
 0x38b   : > { %v2156_v61 = vmul.f32 %v2062_v33, %v4359_v32  ;;  %v2100_v31 = vpop.permute.xlu0 %2099 }
 0x38c   : > { %v2175_v52 = vmul.f32 %v2100_v31, %v4361_v41 }
 0x38d   : > { %2241 = vrot.lane.b32.xlu1 %v2156_v61, %s2876_s9 }
 0x38e   : > { %v2102_v35 = vpop.permute.xlu1 %2101  ;;  %2279 = vrot.lane.b32.xlu0 %v2175_v52, %s2876_s9 }
 0x38f   : > { %v2176_v48 = vmul.f32 %v2102_v35, %v4373_v44  ;;  %v2072_v30 = vpop.permute.xlu0 %2071 }
 0x390   : > { %v2161_v26 = vmul.f32 %v2072_v30, %v4375_v42 }
 0x391   : > { %2281 = vrot.lane.b32.xlu1 %v2176_v48, %s2876_s9 }
 0x392   : > { %v2074_v37 = vpop.permute.xlu1 %2073  ;;  %2251 = vrot.lane.b32.xlu0 %v2161_v26, %s2876_s9  ;;  %v4939_v26 = vld [vmem:[#allocation20_spill] sm:$0xff] }
 0x393   : > { %v2162_v32 = vmul.f32 %v2074_v37, %v4387_v19  ;;  %v2068_v9 = vpop.permute.xlu0 %2067  ;;  %v4937_v19 = vld [vmem:[#allocation17_spill] sm:$0xff] }
 0x394   : > { %v2159_v41 = vmul.f32 %v2068_v9, %v4389_v13  ;;  %v2177_v14 = vmul.f32 %v2104_v11, %v4937_v19 }
 0x395   : > { %2253 = vrot.lane.b32.xlu1 %v2162_v32, %s2876_s9 }
 0x396   : > { %v2070_v45 = vpop.permute.xlu1 %2069  ;;  %2247 = vrot.lane.b32.xlu0 %v2159_v41, %s2876_s9 }
 0x397   : > { %v2160_v44 = vmul.f32 %v2070_v45, %v4398_v36  ;;  %v2220_v42 = vpop.permute.xlu0 %2219 }
 0x398   : > { %v2325_v13 = vsel %vm1393_vm14, %v4400_v22, %v2220_v42 }
 0x399   : > { %2362 = vst.msk [vmem:[%s4645_s18 + $0x10] sm:$0xff] %vm2359_vm0, %v2325_v13  ;;  %2249 = vrot.lane.b32.xlu1 %v2160_v44, %s2876_s9  ;;  %v4940_v13 = vld [vmem:[#allocation21_spill] sm:$0xff] }
 0x39a   : > { %v2222_v12 = vpop.permute.xlu1 %2221  ;;  %2283 = vrot.lane.b32.xlu0 %v2177_v14, %s2876_s9 }
 0x39b   : > { %v2326_v36 = vsel %vm1393_vm14, %v4408_v20, %v2222_v12  ;;  %v2260_v57 = vpop.permute.xlu0 %2259 }
 0x39c   : > { %2363 = vst.msk [vmem:[%s4645_s18 + $0x18] sm:$0xff] %vm2359_vm0, %v2326_v36  ;;  %v2345_v22 = vsel %vm1393_vm14, %v4410_v3, %v2260_v57 }
 0x39d   : > { %2382 = vst.msk [vmem:[%s4645_s18 + $0xb0] sm:$0xff] %vm2359_vm0, %v2345_v22  ;;  %2285 = vrot.lane.b32.xlu1 %v2178_v0, %s2876_s9 }
 0x39e   : > { %v2262_v23 = vpop.permute.xlu1 %2261 }
 0x39f   : > { %v2346_v58 = vsel %vm1393_vm14, %v4418_v39, %v2262_v23  ;;  %v2216_v2 = vpop.permute.xlu0 %2215 }
 0x3a0   : > { %2383 = vst.msk [vmem:[%s4645_s18 + $0xb8] sm:$0xff] %vm2359_vm0, %v2346_v58  ;;  %v2323_v20 = vsel %vm1393_vm14, %v4420_v27, %v2216_v2 }
 0x3a1   : > { %2360 = vst.msk [vmem:[%s4645_s18] sm:$0xff] %vm2359_vm0, %v2323_v20 }
 0x3a2   : > { %v2218_v3 = vpop.permute.xlu1 %2217 }
 0x3a3   : > { %v2324_v59 = vsel %vm1393_vm14, %v4428_v63, %v2218_v3  ;;  %v2256_v11 = vpop.permute.xlu0 %2255  ;;  %v4941_v3 = vld [vmem:[#allocation22_spill] sm:$0xff] }
 0x3a4   : > { %2361 = vst.msk [vmem:[%s4645_s18 + $0x8] sm:$0xff] %vm2359_vm0, %v2324_v59  ;;  %v2343_v39 = vsel %vm1393_vm14, %v4430_v56, %v2256_v11  ;;  %v4942_v11 = vld [vmem:[#allocation23_spill] sm:$0xff] }
 0x3a5   : > { %2380 = vst.msk [vmem:[%s4645_s18 + $0xa0] sm:$0xff] %vm2359_vm0, %v2343_v39 }
 0x3a6   : > { %v2258_v10 = vpop.permute.xlu1 %2257 }
 0x3a7   : > { %v2344_v27 = vsel %vm1393_vm14, %v4438_v17, %v2258_v10  ;;  %v2228_v53 = vpop.permute.xlu0 %2227 }
 0x3a8   : > { %2381 = vst.msk [vmem:[%s4645_s18 + $0xa8] sm:$0xff] %vm2359_vm0, %v2344_v27  ;;  %v2329_v63 = vsel %vm1393_vm14, %v4440_v5, %v2228_v53 }
 0x3a9   : > { %2366 = vst.msk [vmem:[%s4645_s18 + $0x30] sm:$0xff] %vm2359_vm0, %v2329_v63 }
 0x3aa   : > { %v2230_v54 = vpop.permute.xlu1 %2229 }
 0x3ab   : > { %v2330_v56 = vsel %vm1393_vm14, %v4448_v60, %v2230_v54  ;;  %v2268_v51 = vpop.permute.xlu0 %2267 }
 0x3ac   : > { %2367 = vst.msk [vmem:[%s4645_s18 + $0x38] sm:$0xff] %vm2359_vm0, %v2330_v56  ;;  %v2349_v17 = vsel %vm1393_vm14, %v4450_v62, %v2268_v51 }
 0x3ad   : > { %2386 = vst.msk [vmem:[%s4645_s18 + $0xd0] sm:$0xff] %vm2359_vm0, %v2349_v17 }
 0x3ae   : > { %v2270_v33 = vpop.permute.xlu1 %2269 }
 0x3af   : > { %v2350_v5 = vsel %vm1393_vm14, %v4457_v47, %v2270_v33  ;;  %v2224_v61 = vpop.permute.xlu0 %2223 }
 0x3b0   : > { %2387 = vst.msk [vmem:[%s4645_s18 + $0xd8] sm:$0xff] %vm2359_vm0, %v2350_v5  ;;  %v2327_v60 = vsel %vm1393_vm14, %v4459_v49, %v2224_v61 }
 0x3b1   : > { %2364 = vst.msk [vmem:[%s4645_s18 + $0x20] sm:$0xff] %vm2359_vm0, %v2327_v60 }
 0x3b2   : > { %v2226_v31 = vpop.permute.xlu1 %2225 }
 0x3b3   : > { %v2328_v62 = vsel %vm1393_vm14, %v4465_v29, %v2226_v31  ;;  %v2264_v52 = vpop.permute.xlu0 %2263 }
 0x3b4   : > { %2365 = vst.msk [vmem:[%s4645_s18 + $0x28] sm:$0xff] %vm2359_vm0, %v2328_v62  ;;  %v2347_v47 = vsel %vm1393_vm14, %v4467_v34, %v2264_v52 }
 0x3b5   : > { %2384 = vst.msk [vmem:[%s4645_s18 + $0xc0] sm:$0xff] %vm2359_vm0, %v2347_v47 }
 0x3b6   : > { %v2266_v35 = vpop.permute.xlu1 %2265 }
 0x3b7   : > { %v2348_v49 = vsel %vm1393_vm14, %v4473_v16, %v2266_v35  ;;  %v2236_v48 = vpop.permute.xlu0 %2235 }
 0x3b8   : > { %2385 = vst.msk [vmem:[%s4645_s18 + $0xc8] sm:$0xff] %vm2359_vm0, %v2348_v49  ;;  %v2333_v29 = vsel %vm1393_vm14, %v4475_v28, %v2236_v48 }
 0x3b9   : > { %2370 = vst.msk [vmem:[%s4645_s18 + $0x50] sm:$0xff] %vm2359_vm0, %v2333_v29 }
 0x3ba   : > { %v2238_v30 = vpop.permute.xlu1 %2237 }
 0x3bb   : > { %v2334_v34 = vsel %vm1393_vm14, %v4939_v26, %v2238_v30 }
 0x3bc   : > { %v2276_v37 = vpop.permute.xlu0 %2275  ;;  %2371 = vst.msk [vmem:[%s4645_s18 + $0x58] sm:$0xff] %vm2359_vm0, %v2334_v34 }
 0x3bd   : > { %v2353_v16 = vsel %vm1393_vm14, %v4490_v50, %v2276_v37 }
 0x3be   : > { %2390 = vst.msk [vmem:[%s4645_s18 + $0xf0] sm:$0xff] %vm2359_vm0, %v2353_v16 }
 0x3bf   : > { %v2278_v32 = vpop.permute.xlu1 %2277 }
 0x3c0   : > { %v2354_v28 = vsel %vm1393_vm14, %v4496_v7, %v2278_v32  ;;  %v2232_v9 = vpop.permute.xlu0 %2231 }
 0x3c1   : > { %2391 = vst.msk [vmem:[%s4645_s18 + $0xf8] sm:$0xff] %vm2359_vm0, %v2354_v28  ;;  %v2331_v41 = vsel %vm1393_vm14, %v4499_v21, %v2232_v9 }
 0x3c2   : > { %2368 = vst.msk [vmem:[%s4645_s18 + $0x40] sm:$0xff] %vm2359_vm0, %v2331_v41 }
 0x3c3   : > { %v2234_v45 = vpop.permute.xlu1 %2233 }
 0x3c4   : > { %v2332_v50 = vsel %vm1393_vm14, %v4505_v15, %v2234_v45  ;;  %v2272_v44 = vpop.permute.xlu0 %2271 }
 0x3c5   : > { %2369 = vst.msk [vmem:[%s4645_s18 + $0x48] sm:$0xff] %vm2359_vm0, %v2332_v50  ;;  %v2351_v7 = vsel %vm1393_vm14, %v4507_v6, %v2272_v44 }
 0x3c6   : > { %2388 = vst.msk [vmem:[%s4645_s18 + $0xe0] sm:$0xff] %vm2359_vm0, %v2351_v7 }
 0x3c7   : > { %v2274_v42 = vpop.permute.xlu1 %2273 }
 0x3c8   : > { %v2352_v21 = vsel %vm1393_vm14, %v4513_v38, %v2274_v42  ;;  %v2244_v19 = vpop.permute.xlu0 %2243 }
 0x3c9   : > { %2389 = vst.msk [vmem:[%s4645_s18 + $0xe8] sm:$0xff] %vm2359_vm0, %v2352_v21  ;;  %v2337_v15 = vsel %vm1393_vm14, %v4515_v1, %v2244_v19 }
 0x3ca   : > { %2374 = vst.msk [vmem:[%s4645_s18 + $0x70] sm:$0xff] %vm2359_vm0, %v2337_v15 }
 0x3cb   : > { %v2246_v14 = vpop.permute.xlu1 %2245 }
 0x3cc   : > { %v2338_v6 = vsel %vm1393_vm14, %v4940_v13, %v2246_v14 }
 0x3cd   : > { %2375 = vst.msk [vmem:[%s4645_s18 + $0x78] sm:$0xff] %vm2359_vm0, %v2338_v6 }
 0x3fc   : > { %v2240_v12 = vpop.permute.xlu0 %2239 }
 0x3fd   : > { %v2335_v38 = vsel %vm1393_vm14, %v4540_v25, %v2240_v12 }
 0x3fe   : > { %2372 = vst.msk [vmem:[%s4645_s18 + $0x60] sm:$0xff] %vm2359_vm0, %v2335_v38 }
 0x3ff   : > { %v2242_v40 = vpop.permute.xlu1 %2241 }
 0x400   : > { %v2336_v1 = vsel %vm1393_vm14, %v4546_v18, %v2242_v40  ;;  %v2280_v0 = vpop.permute.xlu0 %2279 }
 0x401   : > { %2373 = vst.msk [vmem:[%s4645_s18 + $0x68] sm:$0xff] %vm2359_vm0, %v2336_v1  ;;  %v2355_v36 = vsel %vm1393_vm14, %v4549_v24, %v2280_v0 }
 0x402   : > { %2392 = vst.msk [vmem:[%s4645_s18 + $0x100] sm:$0xff] %vm2359_vm0, %v2355_v36 }
 0x403   : > { %v2282_v57 = vpop.permute.xlu1 %2281 }
 0x404   : > { %v2356_v25 = vsel %vm1393_vm14, %v4555_v55, %v2282_v57  ;;  %v2252_v22 = vpop.permute.xlu0 %2251 }
 0x405   : > { %2393 = vst.msk [vmem:[%s4645_s18 + $0x108] sm:$0xff] %vm2359_vm0, %v2356_v25  ;;  %v2341_v18 = vsel %vm1393_vm14, %v4557_v43, %v2252_v22 }
 0x406   : > { %2378 = vst.msk [vmem:[%s4645_s18 + $0x90] sm:$0xff] %vm2359_vm0, %v2341_v18 }
 0x407   : > { %v2254_v23 = vpop.permute.xlu1 %2253 }
 0x408   : > { %v2342_v24 = vsel %vm1393_vm14, %v4563_v46, %v2254_v23  ;;  %v2248_v58 = vpop.permute.xlu0 %2247 }
 0x409   : > { %2379 = vst.msk [vmem:[%s4645_s18 + $0x98] sm:$0xff] %vm2359_vm0, %v2342_v24  ;;  %v2339_v55 = vsel %vm1393_vm14, %v4565_v4, %v2248_v58 }
 0x40a   : > { %2376 = vst.msk [vmem:[%s4645_s18 + $0x80] sm:$0xff] %vm2359_vm0, %v2339_v55 }
 0x40b   : > { %v2250_v2 = vpop.permute.xlu1 %2249 }
 0x40c   : > { %v2340_v20 = vsel %vm1393_vm14, %v4571_v8, %v2250_v2  ;;  %v2284_v43 = vpop.permute.xlu0 %2283 }
 0x40d   : > { %2377 = vst.msk [vmem:[%s4645_s18 + $0x88] sm:$0xff] %vm2359_vm0, %v2340_v20  ;;  %v2357_v59 = vsel %vm1393_vm14, %v4941_v3, %v2284_v43 }
 0x40e   : > { %2394 = vst.msk [vmem:[%s4645_s18 + $0x110] sm:$0xff] %vm2359_vm0, %v2357_v59 }
 0x40f   : > { %v2286_v46 = vpop.permute.xlu1 %2285 }
 0x410   : > { %v2358_v39 = vsel %vm1393_vm14, %v4942_v11, %v2286_v46 }
 0x411   : > { %2395 = vst.msk [vmem:[%s4645_s18 + $0x118] sm:$0xff] %vm2359_vm0, %v2358_v39 }
 0x412 PF: > { %s13_s14 = sadd.s32 1, %s2866_s14   ;;  %s4943_s12 = smov %s2862_s13 }
 0x413   : > { %p10_p5 = scmp.ge.s32.totalorder %s13_s14, 4   ;;  %s4944_s13 = smov %s4946_s15 }
 0x415   :  { %12 = sbr.rel (!%p10_p5) target bundleno = 2 (0x2), region = 62 }

</bundles_post_ra>
